<compile_context>
chip_gen: v7x
topology: tpu7x:2x2x1
jax: 0.10.0
libtpu: 0.0.40
codegen_flags: <defaults>
</compile_context>

<pallas_src>
import jax
import jax.numpy as jnp
from jax.experimental import pallas as pl
from jax.experimental.pallas import tpu as pltpu

NC = 16  # feature width of the synthetic DRUNet-style body


# ---------------------------------------------------------------------------
# Weight packing (wrapper-side, one-time): HWIO f32 -> matmul-ready form.
# ---------------------------------------------------------------------------
def _pack_im2col(w):
    """(3,3,cin,cout) HWIO -> (cout, 9*cin) bf16, K index = (dy*3+dx)*cin + ci."""
    cout = w.shape[-1]
    return jnp.transpose(w, (3, 0, 1, 2)).reshape(cout, -1).astype(jnp.bfloat16)


def _pack_per_tap(w):
    """(3,3,cin,cout) HWIO -> (9, cout, cin) per-tap matrices (kept f32)."""
    cin, cout = w.shape[2], w.shape[3]
    return jnp.transpose(w, (0, 1, 3, 2)).reshape(9, cout, cin)


# ---------------------------------------------------------------------------
# Fused forward kernel.
# ---------------------------------------------------------------------------
def _make_drunet_kernel(H, W):
    N = H * W

    def shifted_taps(x, pos, col):
        """Yield (tap_index, zero-padded shifted copy of x) for the 9 taps.

        Activations are (C, H*W) with the flattened image on the lane axis.
        Tap (dy, dx) needs source pixel (r+dy-1, c+dx-1) for destination
        (r, c), i.e. a lane shift by off = (dy-1)*W + (dx-1).
        pltpu.roll follows jnp.roll semantics, so roll(x, -off) gives
        shifted[:, p] = x[:, p + off]; sources outside the image are zeroed
        with masks, reproducing 'same' zero padding without padded copies.
        """
        for dy in range(3):
            for dx in range(3):
                off = (dy - 1) * W + (dx - 1)
                t = x if off == 0 else pltpu.roll(x, (-off) % N, 1)
                m = None
                if dy == 0:                      # source row = r - 1 >= 0
                    m = pos >= W
                elif dy == 2:                    # source row = r + 1 <= H - 1
                    m = pos < (H - 1) * W
                if dx == 0:                      # source col = c - 1 >= 0
                    c = col >= 1
                    m = c if m is None else m & c
                elif dx == 2:                    # source col = c + 1 <= W - 1
                    c = col <= W - 2
                    m = c if m is None else m & c
                if m is not None:
                    t = jnp.where(m, t, 0.0)
                yield dy * 3 + dx, t

    def conv_im2col(x, w_ref, pos, col, *, relu=False, residual=None):
        """3x3 conv as ONE bf16 MXU matmul: (cout, 9*cin) @ (9*cin, H*W)."""
        taps = [t.astype(jnp.bfloat16) for _, t in shifted_taps(x, pos, col)]
        slab = jnp.concatenate(taps, axis=0)          # (9*cin, N) bf16, aligned
        y = jnp.dot(w_ref[...], slab, preferred_element_type=jnp.float32)
        if residual is not None:
            y = y + residual
        if relu:
            y = jnp.maximum(y, 0.0)
        return y

    def conv_per_tap(x, w_ref, pos, col):
        """3x3 conv as 9 accumulated per-tap matmuls (f32, K = cin = 2).

        Used only for the tiny 2-channel head conv, whose 2-row tap blocks
        would make the im2col sublane concatenation unaligned.
        """
        acc = None
        for t_idx, t in shifted_taps(x, pos, col):
            y = jnp.dot(w_ref[t_idx], t, preferred_element_type=jnp.float32)
            acc = y if acc is None else acc + y
        return acc

    def kernel(sig_ref, x_ref, col_ref, wh_ref, w1a_ref, w1b_ref,
               w2a_ref, w2b_ref, wt_ref, out_ref):
        # Destination-pixel indices, shared by every conv in the stack.
        pos = jax.lax.broadcasted_iota(jnp.int32, (1, N), 1)   # flat pixel id
        col = col_ref[...]                                     # pixel column

        # Head input: channel 0 = image, channel 1 = sigma/255 broadcast from
        # a 4-byte scalar (no materialized noise plane, no concat in HBM).
        s = sig_ref[0, 0]
        chan = jax.lax.broadcasted_iota(jnp.int32, (2, N), 0)
        x0 = jnp.where(chan == 0, jnp.broadcast_to(x_ref[...], (2, N)), s)

        h = conv_per_tap(x0, wh_ref, pos, col)                    # 2  -> NC
        r = conv_im2col(h, w1a_ref, pos, col, relu=True)          # res block 1
        h = conv_im2col(r, w1b_ref, pos, col, residual=h)
        r = conv_im2col(h, w2a_ref, pos, col, relu=True)          # res block 2
        h = conv_im2col(r, w2b_ref, pos, col, residual=h)
        out_ref[...] = conv_im2col(h, wt_ref, pos, col)           # NC -> 1

    return kernel


# ---------------------------------------------------------------------------
# Public wrapper mirroring Drunet_running.forward.
# ---------------------------------------------------------------------------
def init_params(key, cin=2, nc=NC, cout=1):
    """Deterministic synthetic weights (HWIO, bias-free like DRUNet convs)."""
    ks = jax.random.split(key, 6)

    def w(k, ci, co):
        scale = 1.0 / jnp.sqrt(9.0 * ci)
        return jax.random.normal(k, (3, 3, ci, co), jnp.float32) * scale

    return {
        "head":   w(ks[0], cin, nc),
        "res1_a": w(ks[1], nc, nc),
        "res1_b": w(ks[2], nc, nc),
        "res2_a": w(ks[3], nc, nc),
        "res2_b": w(ks[4], nc, nc),
        "tail":   w(ks[5], nc, cout),
    }


def drunet_running_forward(params, x_hw, sigma):
    """(H, W) image + scalar sigma -> (1, 1, H, W), like Drunet_running.forward."""
    H, W = x_hw.shape
    N = H * W

    x_flat = x_hw.astype(jnp.float32).reshape(1, N)
    sig = jnp.full((1, 1), float(sigma) / 255.0, dtype=jnp.float32)
    col_ids = (jnp.arange(N, dtype=jnp.int32) % W).reshape(1, N)

    wh = _pack_per_tap(params["head"])        # (9, NC, 2)  f32
    w1a = _pack_im2col(params["res1_a"])      # (NC, 9*NC)  bf16
    w1b = _pack_im2col(params["res1_b"])
    w2a = _pack_im2col(params["res2_a"])
    w2b = _pack_im2col(params["res2_b"])
    wt = _pack_im2col(params["tail"])         # (1, 9*NC)   bf16

    spec2 = lambda shape: pl.BlockSpec(shape, lambda i: (0, 0))
    spec3 = lambda shape: pl.BlockSpec(shape, lambda i: (0, 0, 0))

    # TODO(synk): at realistic image sizes, tile H into halo'd row blocks on a
    # "parallel" grid axis (v7x megacore) and raise vmem_limit_bytes; a single
    # VMEM-resident block is the right shape for this small demo size.
    y_flat = pl.pallas_call(
        _make_drunet_kernel(H, W),
        out_shape=jax.ShapeDtypeStruct((1, N), jnp.float32),
        grid=(1,),
        in_specs=[
            spec2((1, 1)),            # sigma / 255 scalar
            spec2((1, N)),            # flattened image
            spec2((1, N)),            # pixel column indices (boundary masks)
            spec3((9, NC, 2)),        # head conv, per-tap
            spec2((NC, 9 * NC)),      # res block 1, conv a
            spec2((NC, 9 * NC)),      # res block 1, conv b
            spec2((NC, 9 * NC)),      # res block 2, conv a
            spec2((NC, 9 * NC)),      # res block 2, conv b
            spec2((1, 9 * NC)),       # tail conv
        ],
        out_specs=spec2((1, N)),
        compiler_params=pltpu.CompilerParams(
            dimension_semantics=("arbitrary",)),
    )(sig, x_flat, col_ids, wh, w1a, w1b, w2a, w2b, wt)

    return y_flat.reshape(1, 1, H, W)


if __name__ == "__main__":
    key = jax.random.PRNGKey(0)
    kx, kp = jax.random.split(key)

    H = W = 16
    x = jax.random.uniform(kx, (H, W), dtype=jnp.float32)   # image in [0, 1)
    sigma = 15.0                                            # noise level
    params = init_params(kp)

    out = drunet_running_forward(params, x, sigma)
    out = jax.block_until_ready(out)

    assert out.shape == (1, 1, H, W), out.shape
    assert out.dtype == jnp.float32
    assert bool(jnp.all(jnp.isfinite(out)))
    print("KERNEL_OK")
</pallas_src>

<mosaic_0001>
module attributes {stable_mosaic.version = 11 : i64} {
  func.func @kernel(%arg0: i32, %arg1: memref<1x1xf32, #tpu.memory_space<vmem>>, %arg2: memref<1x256xf32, #tpu.memory_space<vmem>>, %arg3: memref<1x256xi32, #tpu.memory_space<vmem>>, %arg4: memref<9x16x2xf32, #tpu.memory_space<vmem>>, %arg5: memref<16x144xbf16, #tpu.memory_space<vmem>>, %arg6: memref<16x144xbf16, #tpu.memory_space<vmem>>, %arg7: memref<16x144xbf16, #tpu.memory_space<vmem>>, %arg8: memref<16x144xbf16, #tpu.memory_space<vmem>>, %arg9: memref<1x144xbf16, #tpu.memory_space<vmem>>, %arg10: memref<1x256xf32, #tpu.memory_space<vmem>>) attributes {dimension_semantics = [#tpu.dimension_semantics<arbitrary>], iteration_bounds = array<i64: 1>, scalar_prefetch = 0 : i64, scratch_operands = 0 : i64, tpu.core_type = #tpu.core_type<tc>, window_params = [{pipeline_mode = #tpu.pipeline_mode<synchronous>, transform_indices = @transform_0, window_bounds = array<i64: 1, 1>}, {pipeline_mode = #tpu.pipeline_mode<synchronous>, transform_indices = @transform_1, window_bounds = array<i64: 1, 256>}, {pipeline_mode = #tpu.pipeline_mode<synchronous>, transform_indices = @transform_2, window_bounds = array<i64: 1, 256>}, {pipeline_mode = #tpu.pipeline_mode<synchronous>, transform_indices = @transform_3, window_bounds = array<i64: 9, 16, 2>}, {pipeline_mode = #tpu.pipeline_mode<synchronous>, transform_indices = @transform_4, window_bounds = array<i64: 16, 144>}, {pipeline_mode = #tpu.pipeline_mode<synchronous>, transform_indices = @transform_5, window_bounds = array<i64: 16, 144>}, {pipeline_mode = #tpu.pipeline_mode<synchronous>, transform_indices = @transform_6, window_bounds = array<i64: 16, 144>}, {pipeline_mode = #tpu.pipeline_mode<synchronous>, transform_indices = @transform_7, window_bounds = array<i64: 16, 144>}, {pipeline_mode = #tpu.pipeline_mode<synchronous>, transform_indices = @transform_8, window_bounds = array<i64: 1, 144>}, {pipeline_mode = #tpu.pipeline_mode<synchronous>, transform_indices = @transform_9, window_bounds = array<i64: 1, 256>}]} {
    %0 = tpu.iota {dimensions = array<i32: 1>} : vector<1x256xi32>
    %c0 = arith.constant 0 : index
    %c0_0 = arith.constant 0 : index
    %1 = vector.load %arg3[%c0, %c0_0] : memref<1x256xi32, #tpu.memory_space<vmem>>, vector<1x256xi32>
    %c0_1 = arith.constant 0 : index
    %c0_2 = arith.constant 0 : index
    %2 = vector.load %arg1[%c0_1, %c0_2] : memref<1x1xf32, #tpu.memory_space<vmem>>, vector<1x1xf32>
    %3 = vector.extract %2[0, 0] : f32 from vector<1x1xf32>
    %4 = tpu.iota {dimensions = array<i32: 0>} : vector<2x256xi32>
    %c0_i32 = arith.constant 0 : i32
    %5 = vector.broadcast %c0_i32 : i32 to vector<2x256xi32>
    %6 = arith.cmpi eq, %4, %5 : vector<2x256xi32>
    %c0_3 = arith.constant 0 : index
    %c0_4 = arith.constant 0 : index
    %7 = vector.load %arg2[%c0_3, %c0_4] : memref<1x256xf32, #tpu.memory_space<vmem>>, vector<1x256xf32>
    %8 = vector.shape_cast %7 : vector<1x256xf32> to vector<1x256xf32>
    %9 = vector.broadcast %8 : vector<1x256xf32> to vector<2x256xf32>
    %10 = vector.broadcast %3 : f32 to vector<2x256xf32>
    %11 = arith.select %6, %9, %10 : vector<2x256xi1>, vector<2x256xf32>
    %c17_i32 = arith.constant 17 : i32
    %12 = tpu.dynamic_rotate %11 by %c17_i32 dim 1 : vector<2x256xf32>, i32 -> vector<2x256xf32>
    %c16_i32 = arith.constant 16 : i32
    %13 = vector.broadcast %c16_i32 : i32 to vector<1x256xi32>
    %14 = arith.cmpi sge, %0, %13 : vector<1x256xi32>
    %c1_i32 = arith.constant 1 : i32
    %15 = vector.broadcast %c1_i32 : i32 to vector<1x256xi32>
    %16 = arith.cmpi sge, %1, %15 : vector<1x256xi32>
    %17 = arith.andi %14, %16 : vector<1x256xi1>
    %cst = arith.constant 0.000000e+00 : f32
    %18 = vector.shape_cast %17 : vector<1x256xi1> to vector<1x256xi1>
    %19 = vector.broadcast %18 : vector<1x256xi1> to vector<2x256xi1>
    %20 = vector.broadcast %cst : f32 to vector<2x256xf32>
    %21 = arith.select %19, %12, %20 : vector<2x256xi1>, vector<2x256xf32>
    %c0_5 = arith.constant 0 : index
    %c0_6 = arith.constant 0 : index
    %c0_7 = arith.constant 0 : index
    %22 = vector.load %arg4[%c0_5, %c0_6, %c0_7] : memref<9x16x2xf32, #tpu.memory_space<vmem>>, vector<1x16x2xf32>
    %23 = vector.shape_cast %22 : vector<1x16x2xf32> to vector<16x2xf32>
    %cst_8 = arith.constant dense<0.000000e+00> : vector<16x256xf32>
    %24 = tpu.matmul %23, %21, %cst_8 {dimension_numbers = #tpu.dot_dimension_numbers<[1], [0], [0], [1], [0, 0, 1, 1], [], []>} : vector<16x2xf32>, vector<2x256xf32>, vector<16x256xf32> -> vector<16x256xf32>
    %c16_i32_9 = arith.constant 16 : i32
    %25 = tpu.dynamic_rotate %11 by %c16_i32_9 dim 1 : vector<2x256xf32>, i32 -> vector<2x256xf32>
    %c16_i32_10 = arith.constant 16 : i32
    %26 = vector.broadcast %c16_i32_10 : i32 to vector<1x256xi32>
    %27 = arith.cmpi sge, %0, %26 : vector<1x256xi32>
    %cst_11 = arith.constant 0.000000e+00 : f32
    %28 = vector.shape_cast %27 : vector<1x256xi1> to vector<1x256xi1>
    %29 = vector.broadcast %28 : vector<1x256xi1> to vector<2x256xi1>
    %30 = vector.broadcast %cst_11 : f32 to vector<2x256xf32>
    %31 = arith.select %29, %25, %30 : vector<2x256xi1>, vector<2x256xf32>
    %c1 = arith.constant 1 : index
    %c0_12 = arith.constant 0 : index
    %c0_13 = arith.constant 0 : index
    %32 = vector.load %arg4[%c1, %c0_12, %c0_13] : memref<9x16x2xf32, #tpu.memory_space<vmem>>, vector<1x16x2xf32>
    %33 = vector.shape_cast %32 : vector<1x16x2xf32> to vector<16x2xf32>
    %cst_14 = arith.constant dense<0.000000e+00> : vector<16x256xf32>
    %34 = tpu.matmul %33, %31, %cst_14 {dimension_numbers = #tpu.dot_dimension_numbers<[1], [0], [0], [1], [0, 0, 1, 1], [], []>} : vector<16x2xf32>, vector<2x256xf32>, vector<16x256xf32> -> vector<16x256xf32>
    %35 = arith.addf %24, %34 : vector<16x256xf32>
    %c15_i32 = arith.constant 15 : i32
    %36 = tpu.dynamic_rotate %11 by %c15_i32 dim 1 : vector<2x256xf32>, i32 -> vector<2x256xf32>
    %c16_i32_15 = arith.constant 16 : i32
    %37 = vector.broadcast %c16_i32_15 : i32 to vector<1x256xi32>
    %38 = arith.cmpi sge, %0, %37 : vector<1x256xi32>
    %c14_i32 = arith.constant 14 : i32
    %39 = vector.broadcast %c14_i32 : i32 to vector<1x256xi32>
    %40 = arith.cmpi sle, %1, %39 : vector<1x256xi32>
    %41 = arith.andi %38, %40 : vector<1x256xi1>
    %cst_16 = arith.constant 0.000000e+00 : f32
    %42 = vector.shape_cast %41 : vector<1x256xi1> to vector<1x256xi1>
    %43 = vector.broadcast %42 : vector<1x256xi1> to vector<2x256xi1>
    %44 = vector.broadcast %cst_16 : f32 to vector<2x256xf32>
    %45 = arith.select %43, %36, %44 : vector<2x256xi1>, vector<2x256xf32>
    %c2 = arith.constant 2 : index
    %c0_17 = arith.constant 0 : index
    %c0_18 = arith.constant 0 : index
    %46 = vector.load %arg4[%c2, %c0_17, %c0_18] : memref<9x16x2xf32, #tpu.memory_space<vmem>>, vector<1x16x2xf32>
    %47 = vector.shape_cast %46 : vector<1x16x2xf32> to vector<16x2xf32>
    %cst_19 = arith.constant dense<0.000000e+00> : vector<16x256xf32>
    %48 = tpu.matmul %47, %45, %cst_19 {dimension_numbers = #tpu.dot_dimension_numbers<[1], [0], [0], [1], [0, 0, 1, 1], [], []>} : vector<16x2xf32>, vector<2x256xf32>, vector<16x256xf32> -> vector<16x256xf32>
    %49 = arith.addf %35, %48 : vector<16x256xf32>
    %c1_i32_20 = arith.constant 1 : i32
    %50 = tpu.dynamic_rotate %11 by %c1_i32_20 dim 1 : vector<2x256xf32>, i32 -> vector<2x256xf32>
    %c1_i32_21 = arith.constant 1 : i32
    %51 = vector.broadcast %c1_i32_21 : i32 to vector<1x256xi32>
    %52 = arith.cmpi sge, %1, %51 : vector<1x256xi32>
    %cst_22 = arith.constant 0.000000e+00 : f32
    %53 = vector.shape_cast %52 : vector<1x256xi1> to vector<1x256xi1>
    %54 = vector.broadcast %53 : vector<1x256xi1> to vector<2x256xi1>
    %55 = vector.broadcast %cst_22 : f32 to vector<2x256xf32>
    %56 = arith.select %54, %50, %55 : vector<2x256xi1>, vector<2x256xf32>
    %c3 = arith.constant 3 : index
    %c0_23 = arith.constant 0 : index
    %c0_24 = arith.constant 0 : index
    %57 = vector.load %arg4[%c3, %c0_23, %c0_24] : memref<9x16x2xf32, #tpu.memory_space<vmem>>, vector<1x16x2xf32>
    %58 = vector.shape_cast %57 : vector<1x16x2xf32> to vector<16x2xf32>
    %cst_25 = arith.constant dense<0.000000e+00> : vector<16x256xf32>
    %59 = tpu.matmul %58, %56, %cst_25 {dimension_numbers = #tpu.dot_dimension_numbers<[1], [0], [0], [1], [0, 0, 1, 1], [], []>} : vector<16x2xf32>, vector<2x256xf32>, vector<16x256xf32> -> vector<16x256xf32>
    %60 = arith.addf %49, %59 : vector<16x256xf32>
    %c4 = arith.constant 4 : index
    %c0_26 = arith.constant 0 : index
    %c0_27 = arith.constant 0 : index
    %61 = vector.load %arg4[%c4, %c0_26, %c0_27] : memref<9x16x2xf32, #tpu.memory_space<vmem>>, vector<1x16x2xf32>
    %62 = vector.shape_cast %61 : vector<1x16x2xf32> to vector<16x2xf32>
    %cst_28 = arith.constant dense<0.000000e+00> : vector<16x256xf32>
    %63 = tpu.matmul %62, %11, %cst_28 {dimension_numbers = #tpu.dot_dimension_numbers<[1], [0], [0], [1], [0, 0, 1, 1], [], []>} : vector<16x2xf32>, vector<2x256xf32>, vector<16x256xf32> -> vector<16x256xf32>
    %64 = arith.addf %60, %63 : vector<16x256xf32>
    %c255_i32 = arith.constant 255 : i32
    %65 = tpu.dynamic_rotate %11 by %c255_i32 dim 1 : vector<2x256xf32>, i32 -> vector<2x256xf32>
    %c14_i32_29 = arith.constant 14 : i32
    %66 = vector.broadcast %c14_i32_29 : i32 to vector<1x256xi32>
    %67 = arith.cmpi sle, %1, %66 : vector<1x256xi32>
    %cst_30 = arith.constant 0.000000e+00 : f32
    %68 = vector.shape_cast %67 : vector<1x256xi1> to vector<1x256xi1>
    %69 = vector.broadcast %68 : vector<1x256xi1> to vector<2x256xi1>
    %70 = vector.broadcast %cst_30 : f32 to vector<2x256xf32>
    %71 = arith.select %69, %65, %70 : vector<2x256xi1>, vector<2x256xf32>
    %c5 = arith.constant 5 : index
    %c0_31 = arith.constant 0 : index
    %c0_32 = arith.constant 0 : index
    %72 = vector.load %arg4[%c5, %c0_31, %c0_32] : memref<9x16x2xf32, #tpu.memory_space<vmem>>, vector<1x16x2xf32>
    %73 = vector.shape_cast %72 : vector<1x16x2xf32> to vector<16x2xf32>
    %cst_33 = arith.constant dense<0.000000e+00> : vector<16x256xf32>
    %74 = tpu.matmul %73, %71, %cst_33 {dimension_numbers = #tpu.dot_dimension_numbers<[1], [0], [0], [1], [0, 0, 1, 1], [], []>} : vector<16x2xf32>, vector<2x256xf32>, vector<16x256xf32> -> vector<16x256xf32>
    %75 = arith.addf %64, %74 : vector<16x256xf32>
    %c241_i32 = arith.constant 241 : i32
    %76 = tpu.dynamic_rotate %11 by %c241_i32 dim 1 : vector<2x256xf32>, i32 -> vector<2x256xf32>
    %c240_i32 = arith.constant 240 : i32
    %77 = vector.broadcast %c240_i32 : i32 to vector<1x256xi32>
    %78 = arith.cmpi slt, %0, %77 : vector<1x256xi32>
    %c1_i32_34 = arith.constant 1 : i32
    %79 = vector.broadcast %c1_i32_34 : i32 to vector<1x256xi32>
    %80 = arith.cmpi sge, %1, %79 : vector<1x256xi32>
    %81 = arith.andi %78, %80 : vector<1x256xi1>
    %cst_35 = arith.constant 0.000000e+00 : f32
    %82 = vector.shape_cast %81 : vector<1x256xi1> to vector<1x256xi1>
    %83 = vector.broadcast %82 : vector<1x256xi1> to vector<2x256xi1>
    %84 = vector.broadcast %cst_35 : f32 to vector<2x256xf32>
    %85 = arith.select %83, %76, %84 : vector<2x256xi1>, vector<2x256xf32>
    %c6 = arith.constant 6 : index
    %c0_36 = arith.constant 0 : index
    %c0_37 = arith.constant 0 : index
    %86 = vector.load %arg4[%c6, %c0_36, %c0_37] : memref<9x16x2xf32, #tpu.memory_space<vmem>>, vector<1x16x2xf32>
    %87 = vector.shape_cast %86 : vector<1x16x2xf32> to vector<16x2xf32>
    %cst_38 = arith.constant dense<0.000000e+00> : vector<16x256xf32>
    %88 = tpu.matmul %87, %85, %cst_38 {dimension_numbers = #tpu.dot_dimension_numbers<[1], [0], [0], [1], [0, 0, 1, 1], [], []>} : vector<16x2xf32>, vector<2x256xf32>, vector<16x256xf32> -> vector<16x256xf32>
    %89 = arith.addf %75, %88 : vector<16x256xf32>
    %c240_i32_39 = arith.constant 240 : i32
    %90 = tpu.dynamic_rotate %11 by %c240_i32_39 dim 1 : vector<2x256xf32>, i32 -> vector<2x256xf32>
    %c240_i32_40 = arith.constant 240 : i32
    %91 = vector.broadcast %c240_i32_40 : i32 to vector<1x256xi32>
    %92 = arith.cmpi slt, %0, %91 : vector<1x256xi32>
    %cst_41 = arith.constant 0.000000e+00 : f32
    %93 = vector.shape_cast %92 : vector<1x256xi1> to vector<1x256xi1>
    %94 = vector.broadcast %93 : vector<1x256xi1> to vector<2x256xi1>
    %95 = vector.broadcast %cst_41 : f32 to vector<2x256xf32>
    %96 = arith.select %94, %90, %95 : vector<2x256xi1>, vector<2x256xf32>
    %c7 = arith.constant 7 : index
    %c0_42 = arith.constant 0 : index
    %c0_43 = arith.constant 0 : index
    %97 = vector.load %arg4[%c7, %c0_42, %c0_43] : memref<9x16x2xf32, #tpu.memory_space<vmem>>, vector<1x16x2xf32>
    %98 = vector.shape_cast %97 : vector<1x16x2xf32> to vector<16x2xf32>
    %cst_44 = arith.constant dense<0.000000e+00> : vector<16x256xf32>
    %99 = tpu.matmul %98, %96, %cst_44 {dimension_numbers = #tpu.dot_dimension_numbers<[1], [0], [0], [1], [0, 0, 1, 1], [], []>} : vector<16x2xf32>, vector<2x256xf32>, vector<16x256xf32> -> vector<16x256xf32>
    %100 = arith.addf %89, %99 : vector<16x256xf32>
    %c239_i32 = arith.constant 239 : i32
    %101 = tpu.dynamic_rotate %11 by %c239_i32 dim 1 : vector<2x256xf32>, i32 -> vector<2x256xf32>
    %c240_i32_45 = arith.constant 240 : i32
    %102 = vector.broadcast %c240_i32_45 : i32 to vector<1x256xi32>
    %103 = arith.cmpi slt, %0, %102 : vector<1x256xi32>
    %c14_i32_46 = arith.constant 14 : i32
    %104 = vector.broadcast %c14_i32_46 : i32 to vector<1x256xi32>
    %105 = arith.cmpi sle, %1, %104 : vector<1x256xi32>
    %106 = arith.andi %103, %105 : vector<1x256xi1>
    %cst_47 = arith.constant 0.000000e+00 : f32
    %107 = vector.shape_cast %106 : vector<1x256xi1> to vector<1x256xi1>
    %108 = vector.broadcast %107 : vector<1x256xi1> to vector<2x256xi1>
    %109 = vector.broadcast %cst_47 : f32 to vector<2x256xf32>
    %110 = arith.select %108, %101, %109 : vector<2x256xi1>, vector<2x256xf32>
    %c8 = arith.constant 8 : index
    %c0_48 = arith.constant 0 : index
    %c0_49 = arith.constant 0 : index
    %111 = vector.load %arg4[%c8, %c0_48, %c0_49] : memref<9x16x2xf32, #tpu.memory_space<vmem>>, vector<1x16x2xf32>
    %112 = vector.shape_cast %111 : vector<1x16x2xf32> to vector<16x2xf32>
    %cst_50 = arith.constant dense<0.000000e+00> : vector<16x256xf32>
    %113 = tpu.matmul %112, %110, %cst_50 {dimension_numbers = #tpu.dot_dimension_numbers<[1], [0], [0], [1], [0, 0, 1, 1], [], []>} : vector<16x2xf32>, vector<2x256xf32>, vector<16x256xf32> -> vector<16x256xf32>
    %114 = arith.addf %100, %113 : vector<16x256xf32>
    %c17_i32_51 = arith.constant 17 : i32
    %115 = tpu.dynamic_rotate %114 by %c17_i32_51 dim 1 : vector<16x256xf32>, i32 -> vector<16x256xf32>
    %c16_i32_52 = arith.constant 16 : i32
    %116 = vector.broadcast %c16_i32_52 : i32 to vector<1x256xi32>
    %117 = arith.cmpi sge, %0, %116 : vector<1x256xi32>
    %c1_i32_53 = arith.constant 1 : i32
    %118 = vector.broadcast %c1_i32_53 : i32 to vector<1x256xi32>
    %119 = arith.cmpi sge, %1, %118 : vector<1x256xi32>
    %120 = arith.andi %117, %119 : vector<1x256xi1>
    %cst_54 = arith.constant 0.000000e+00 : f32
    %121 = vector.shape_cast %120 : vector<1x256xi1> to vector<1x256xi1>
    %122 = vector.broadcast %121 : vector<1x256xi1> to vector<16x256xi1>
    %123 = vector.broadcast %cst_54 : f32 to vector<16x256xf32>
    %124 = arith.select %122, %115, %123 : vector<16x256xi1>, vector<16x256xf32>
    %125 = arith.truncf %124 : vector<16x256xf32> to vector<16x256xbf16>
    %c16_i32_55 = arith.constant 16 : i32
    %126 = tpu.dynamic_rotate %114 by %c16_i32_55 dim 1 : vector<16x256xf32>, i32 -> vector<16x256xf32>
    %c16_i32_56 = arith.constant 16 : i32
    %127 = vector.broadcast %c16_i32_56 : i32 to vector<1x256xi32>
    %128 = arith.cmpi sge, %0, %127 : vector<1x256xi32>
    %cst_57 = arith.constant 0.000000e+00 : f32
    %129 = vector.shape_cast %128 : vector<1x256xi1> to vector<1x256xi1>
    %130 = vector.broadcast %129 : vector<1x256xi1> to vector<16x256xi1>
    %131 = vector.broadcast %cst_57 : f32 to vector<16x256xf32>
    %132 = arith.select %130, %126, %131 : vector<16x256xi1>, vector<16x256xf32>
    %133 = arith.truncf %132 : vector<16x256xf32> to vector<16x256xbf16>
    %c15_i32_58 = arith.constant 15 : i32
    %134 = tpu.dynamic_rotate %114 by %c15_i32_58 dim 1 : vector<16x256xf32>, i32 -> vector<16x256xf32>
    %c16_i32_59 = arith.constant 16 : i32
    %135 = vector.broadcast %c16_i32_59 : i32 to vector<1x256xi32>
    %136 = arith.cmpi sge, %0, %135 : vector<1x256xi32>
    %c14_i32_60 = arith.constant 14 : i32
    %137 = vector.broadcast %c14_i32_60 : i32 to vector<1x256xi32>
    %138 = arith.cmpi sle, %1, %137 : vector<1x256xi32>
    %139 = arith.andi %136, %138 : vector<1x256xi1>
    %cst_61 = arith.constant 0.000000e+00 : f32
    %140 = vector.shape_cast %139 : vector<1x256xi1> to vector<1x256xi1>
    %141 = vector.broadcast %140 : vector<1x256xi1> to vector<16x256xi1>
    %142 = vector.broadcast %cst_61 : f32 to vector<16x256xf32>
    %143 = arith.select %141, %134, %142 : vector<16x256xi1>, vector<16x256xf32>
    %144 = arith.truncf %143 : vector<16x256xf32> to vector<16x256xbf16>
    %c1_i32_62 = arith.constant 1 : i32
    %145 = tpu.dynamic_rotate %114 by %c1_i32_62 dim 1 : vector<16x256xf32>, i32 -> vector<16x256xf32>
    %c1_i32_63 = arith.constant 1 : i32
    %146 = vector.broadcast %c1_i32_63 : i32 to vector<1x256xi32>
    %147 = arith.cmpi sge, %1, %146 : vector<1x256xi32>
    %cst_64 = arith.constant 0.000000e+00 : f32
    %148 = vector.shape_cast %147 : vector<1x256xi1> to vector<1x256xi1>
    %149 = vector.broadcast %148 : vector<1x256xi1> to vector<16x256xi1>
    %150 = vector.broadcast %cst_64 : f32 to vector<16x256xf32>
    %151 = arith.select %149, %145, %150 : vector<16x256xi1>, vector<16x256xf32>
    %152 = arith.truncf %151 : vector<16x256xf32> to vector<16x256xbf16>
    %153 = arith.truncf %114 : vector<16x256xf32> to vector<16x256xbf16>
    %c255_i32_65 = arith.constant 255 : i32
    %154 = tpu.dynamic_rotate %114 by %c255_i32_65 dim 1 : vector<16x256xf32>, i32 -> vector<16x256xf32>
    %c14_i32_66 = arith.constant 14 : i32
    %155 = vector.broadcast %c14_i32_66 : i32 to vector<1x256xi32>
    %156 = arith.cmpi sle, %1, %155 : vector<1x256xi32>
    %cst_67 = arith.constant 0.000000e+00 : f32
    %157 = vector.shape_cast %156 : vector<1x256xi1> to vector<1x256xi1>
    %158 = vector.broadcast %157 : vector<1x256xi1> to vector<16x256xi1>
    %159 = vector.broadcast %cst_67 : f32 to vector<16x256xf32>
    %160 = arith.select %158, %154, %159 : vector<16x256xi1>, vector<16x256xf32>
    %161 = arith.truncf %160 : vector<16x256xf32> to vector<16x256xbf16>
    %c241_i32_68 = arith.constant 241 : i32
    %162 = tpu.dynamic_rotate %114 by %c241_i32_68 dim 1 : vector<16x256xf32>, i32 -> vector<16x256xf32>
    %c240_i32_69 = arith.constant 240 : i32
    %163 = vector.broadcast %c240_i32_69 : i32 to vector<1x256xi32>
    %164 = arith.cmpi slt, %0, %163 : vector<1x256xi32>
    %c1_i32_70 = arith.constant 1 : i32
    %165 = vector.broadcast %c1_i32_70 : i32 to vector<1x256xi32>
    %166 = arith.cmpi sge, %1, %165 : vector<1x256xi32>
    %167 = arith.andi %164, %166 : vector<1x256xi1>
    %cst_71 = arith.constant 0.000000e+00 : f32
    %168 = vector.shape_cast %167 : vector<1x256xi1> to vector<1x256xi1>
    %169 = vector.broadcast %168 : vector<1x256xi1> to vector<16x256xi1>
    %170 = vector.broadcast %cst_71 : f32 to vector<16x256xf32>
    %171 = arith.select %169, %162, %170 : vector<16x256xi1>, vector<16x256xf32>
    %172 = arith.truncf %171 : vector<16x256xf32> to vector<16x256xbf16>
    %c240_i32_72 = arith.constant 240 : i32
    %173 = tpu.dynamic_rotate %114 by %c240_i32_72 dim 1 : vector<16x256xf32>, i32 -> vector<16x256xf32>
    %c240_i32_73 = arith.constant 240 : i32
    %174 = vector.broadcast %c240_i32_73 : i32 to vector<1x256xi32>
    %175 = arith.cmpi slt, %0, %174 : vector<1x256xi32>
    %cst_74 = arith.constant 0.000000e+00 : f32
    %176 = vector.shape_cast %175 : vector<1x256xi1> to vector<1x256xi1>
    %177 = vector.broadcast %176 : vector<1x256xi1> to vector<16x256xi1>
    %178 = vector.broadcast %cst_74 : f32 to vector<16x256xf32>
    %179 = arith.select %177, %173, %178 : vector<16x256xi1>, vector<16x256xf32>
    %180 = arith.truncf %179 : vector<16x256xf32> to vector<16x256xbf16>
    %c239_i32_75 = arith.constant 239 : i32
    %181 = tpu.dynamic_rotate %114 by %c239_i32_75 dim 1 : vector<16x256xf32>, i32 -> vector<16x256xf32>
    %c240_i32_76 = arith.constant 240 : i32
    %182 = vector.broadcast %c240_i32_76 : i32 to vector<1x256xi32>
    %183 = arith.cmpi slt, %0, %182 : vector<1x256xi32>
    %c14_i32_77 = arith.constant 14 : i32
    %184 = vector.broadcast %c14_i32_77 : i32 to vector<1x256xi32>
    %185 = arith.cmpi sle, %1, %184 : vector<1x256xi32>
    %186 = arith.andi %183, %185 : vector<1x256xi1>
    %cst_78 = arith.constant 0.000000e+00 : f32
    %187 = vector.shape_cast %186 : vector<1x256xi1> to vector<1x256xi1>
    %188 = vector.broadcast %187 : vector<1x256xi1> to vector<16x256xi1>
    %189 = vector.broadcast %cst_78 : f32 to vector<16x256xf32>
    %190 = arith.select %188, %181, %189 : vector<16x256xi1>, vector<16x256xf32>
    %191 = arith.truncf %190 : vector<16x256xf32> to vector<16x256xbf16>
    %192 = tpu.concatenate %125, %133, %144, %152, %153, %161, %172, %180, %191 in 0 : vector<16x256xbf16>, vector<16x256xbf16>, vector<16x256xbf16>, vector<16x256xbf16>, vector<16x256xbf16>, vector<16x256xbf16>, vector<16x256xbf16>, vector<16x256xbf16>, vector<16x256xbf16> -> vector<144x256xbf16>
    %c0_79 = arith.constant 0 : index
    %c0_80 = arith.constant 0 : index
    %193 = vector.load %arg5[%c0_79, %c0_80] : memref<16x144xbf16, #tpu.memory_space<vmem>>, vector<16x144xbf16>
    %cst_81 = arith.constant dense<0.000000e+00> : vector<16x256xf32>
    %194 = tpu.matmul %193, %192, %cst_81 {dimension_numbers = #tpu.dot_dimension_numbers<[1], [0], [0], [1], [0, 0, 1, 1], [], []>} : vector<16x144xbf16>, vector<144x256xbf16>, vector<16x256xf32> -> vector<16x256xf32>
    %cst_82 = arith.constant 0.000000e+00 : f32
    %195 = vector.broadcast %cst_82 : f32 to vector<16x256xf32>
    %196 = arith.maximumf %194, %195 : vector<16x256xf32>
    %c17_i32_83 = arith.constant 17 : i32
    %197 = tpu.dynamic_rotate %196 by %c17_i32_83 dim 1 : vector<16x256xf32>, i32 -> vector<16x256xf32>
    %c16_i32_84 = arith.constant 16 : i32
    %198 = vector.broadcast %c16_i32_84 : i32 to vector<1x256xi32>
    %199 = arith.cmpi sge, %0, %198 : vector<1x256xi32>
    %c1_i32_85 = arith.constant 1 : i32
    %200 = vector.broadcast %c1_i32_85 : i32 to vector<1x256xi32>
    %201 = arith.cmpi sge, %1, %200 : vector<1x256xi32>
    %202 = arith.andi %199, %201 : vector<1x256xi1>
    %cst_86 = arith.constant 0.000000e+00 : f32
    %203 = vector.shape_cast %202 : vector<1x256xi1> to vector<1x256xi1>
    %204 = vector.broadcast %203 : vector<1x256xi1> to vector<16x256xi1>
    %205 = vector.broadcast %cst_86 : f32 to vector<16x256xf32>
    %206 = arith.select %204, %197, %205 : vector<16x256xi1>, vector<16x256xf32>
    %207 = arith.truncf %206 : vector<16x256xf32> to vector<16x256xbf16>
    %c16_i32_87 = arith.constant 16 : i32
    %208 = tpu.dynamic_rotate %196 by %c16_i32_87 dim 1 : vector<16x256xf32>, i32 -> vector<16x256xf32>
    %c16_i32_88 = arith.constant 16 : i32
    %209 = vector.broadcast %c16_i32_88 : i32 to vector<1x256xi32>
    %210 = arith.cmpi sge, %0, %209 : vector<1x256xi32>
    %cst_89 = arith.constant 0.000000e+00 : f32
    %211 = vector.shape_cast %210 : vector<1x256xi1> to vector<1x256xi1>
    %212 = vector.broadcast %211 : vector<1x256xi1> to vector<16x256xi1>
    %213 = vector.broadcast %cst_89 : f32 to vector<16x256xf32>
    %214 = arith.select %212, %208, %213 : vector<16x256xi1>, vector<16x256xf32>
    %215 = arith.truncf %214 : vector<16x256xf32> to vector<16x256xbf16>
    %c15_i32_90 = arith.constant 15 : i32
    %216 = tpu.dynamic_rotate %196 by %c15_i32_90 dim 1 : vector<16x256xf32>, i32 -> vector<16x256xf32>
    %c16_i32_91 = arith.constant 16 : i32
    %217 = vector.broadcast %c16_i32_91 : i32 to vector<1x256xi32>
    %218 = arith.cmpi sge, %0, %217 : vector<1x256xi32>
    %c14_i32_92 = arith.constant 14 : i32
    %219 = vector.broadcast %c14_i32_92 : i32 to vector<1x256xi32>
    %220 = arith.cmpi sle, %1, %219 : vector<1x256xi32>
    %221 = arith.andi %218, %220 : vector<1x256xi1>
    %cst_93 = arith.constant 0.000000e+00 : f32
    %222 = vector.shape_cast %221 : vector<1x256xi1> to vector<1x256xi1>
    %223 = vector.broadcast %222 : vector<1x256xi1> to vector<16x256xi1>
    %224 = vector.broadcast %cst_93 : f32 to vector<16x256xf32>
    %225 = arith.select %223, %216, %224 : vector<16x256xi1>, vector<16x256xf32>
    %226 = arith.truncf %225 : vector<16x256xf32> to vector<16x256xbf16>
    %c1_i32_94 = arith.constant 1 : i32
    %227 = tpu.dynamic_rotate %196 by %c1_i32_94 dim 1 : vector<16x256xf32>, i32 -> vector<16x256xf32>
    %c1_i32_95 = arith.constant 1 : i32
    %228 = vector.broadcast %c1_i32_95 : i32 to vector<1x256xi32>
    %229 = arith.cmpi sge, %1, %228 : vector<1x256xi32>
    %cst_96 = arith.constant 0.000000e+00 : f32
    %230 = vector.shape_cast %229 : vector<1x256xi1> to vector<1x256xi1>
    %231 = vector.broadcast %230 : vector<1x256xi1> to vector<16x256xi1>
    %232 = vector.broadcast %cst_96 : f32 to vector<16x256xf32>
    %233 = arith.select %231, %227, %232 : vector<16x256xi1>, vector<16x256xf32>
    %234 = arith.truncf %233 : vector<16x256xf32> to vector<16x256xbf16>
    %235 = arith.truncf %196 : vector<16x256xf32> to vector<16x256xbf16>
    %c255_i32_97 = arith.constant 255 : i32
    %236 = tpu.dynamic_rotate %196 by %c255_i32_97 dim 1 : vector<16x256xf32>, i32 -> vector<16x256xf32>
    %c14_i32_98 = arith.constant 14 : i32
    %237 = vector.broadcast %c14_i32_98 : i32 to vector<1x256xi32>
    %238 = arith.cmpi sle, %1, %237 : vector<1x256xi32>
    %cst_99 = arith.constant 0.000000e+00 : f32
    %239 = vector.shape_cast %238 : vector<1x256xi1> to vector<1x256xi1>
    %240 = vector.broadcast %239 : vector<1x256xi1> to vector<16x256xi1>
    %241 = vector.broadcast %cst_99 : f32 to vector<16x256xf32>
    %242 = arith.select %240, %236, %241 : vector<16x256xi1>, vector<16x256xf32>
    %243 = arith.truncf %242 : vector<16x256xf32> to vector<16x256xbf16>
    %c241_i32_100 = arith.constant 241 : i32
    %244 = tpu.dynamic_rotate %196 by %c241_i32_100 dim 1 : vector<16x256xf32>, i32 -> vector<16x256xf32>
    %c240_i32_101 = arith.constant 240 : i32
    %245 = vector.broadcast %c240_i32_101 : i32 to vector<1x256xi32>
    %246 = arith.cmpi slt, %0, %245 : vector<1x256xi32>
    %c1_i32_102 = arith.constant 1 : i32
    %247 = vector.broadcast %c1_i32_102 : i32 to vector<1x256xi32>
    %248 = arith.cmpi sge, %1, %247 : vector<1x256xi32>
    %249 = arith.andi %246, %248 : vector<1x256xi1>
    %cst_103 = arith.constant 0.000000e+00 : f32
    %250 = vector.shape_cast %249 : vector<1x256xi1> to vector<1x256xi1>
    %251 = vector.broadcast %250 : vector<1x256xi1> to vector<16x256xi1>
    %252 = vector.broadcast %cst_103 : f32 to vector<16x256xf32>
    %253 = arith.select %251, %244, %252 : vector<16x256xi1>, vector<16x256xf32>
    %254 = arith.truncf %253 : vector<16x256xf32> to vector<16x256xbf16>
    %c240_i32_104 = arith.constant 240 : i32
    %255 = tpu.dynamic_rotate %196 by %c240_i32_104 dim 1 : vector<16x256xf32>, i32 -> vector<16x256xf32>
    %c240_i32_105 = arith.constant 240 : i32
    %256 = vector.broadcast %c240_i32_105 : i32 to vector<1x256xi32>
    %257 = arith.cmpi slt, %0, %256 : vector<1x256xi32>
    %cst_106 = arith.constant 0.000000e+00 : f32
    %258 = vector.shape_cast %257 : vector<1x256xi1> to vector<1x256xi1>
    %259 = vector.broadcast %258 : vector<1x256xi1> to vector<16x256xi1>
    %260 = vector.broadcast %cst_106 : f32 to vector<16x256xf32>
    %261 = arith.select %259, %255, %260 : vector<16x256xi1>, vector<16x256xf32>
    %262 = arith.truncf %261 : vector<16x256xf32> to vector<16x256xbf16>
    %c239_i32_107 = arith.constant 239 : i32
    %263 = tpu.dynamic_rotate %196 by %c239_i32_107 dim 1 : vector<16x256xf32>, i32 -> vector<16x256xf32>
    %c240_i32_108 = arith.constant 240 : i32
    %264 = vector.broadcast %c240_i32_108 : i32 to vector<1x256xi32>
    %265 = arith.cmpi slt, %0, %264 : vector<1x256xi32>
    %c14_i32_109 = arith.constant 14 : i32
    %266 = vector.broadcast %c14_i32_109 : i32 to vector<1x256xi32>
    %267 = arith.cmpi sle, %1, %266 : vector<1x256xi32>
    %268 = arith.andi %265, %267 : vector<1x256xi1>
    %cst_110 = arith.constant 0.000000e+00 : f32
    %269 = vector.shape_cast %268 : vector<1x256xi1> to vector<1x256xi1>
    %270 = vector.broadcast %269 : vector<1x256xi1> to vector<16x256xi1>
    %271 = vector.broadcast %cst_110 : f32 to vector<16x256xf32>
    %272 = arith.select %270, %263, %271 : vector<16x256xi1>, vector<16x256xf32>
    %273 = arith.truncf %272 : vector<16x256xf32> to vector<16x256xbf16>
    %274 = tpu.concatenate %207, %215, %226, %234, %235, %243, %254, %262, %273 in 0 : vector<16x256xbf16>, vector<16x256xbf16>, vector<16x256xbf16>, vector<16x256xbf16>, vector<16x256xbf16>, vector<16x256xbf16>, vector<16x256xbf16>, vector<16x256xbf16>, vector<16x256xbf16> -> vector<144x256xbf16>
    %c0_111 = arith.constant 0 : index
    %c0_112 = arith.constant 0 : index
    %275 = vector.load %arg6[%c0_111, %c0_112] : memref<16x144xbf16, #tpu.memory_space<vmem>>, vector<16x144xbf16>
    %cst_113 = arith.constant dense<0.000000e+00> : vector<16x256xf32>
    %276 = tpu.matmul %275, %274, %cst_113 {dimension_numbers = #tpu.dot_dimension_numbers<[1], [0], [0], [1], [0, 0, 1, 1], [], []>} : vector<16x144xbf16>, vector<144x256xbf16>, vector<16x256xf32> -> vector<16x256xf32>
    %277 = arith.addf %276, %114 : vector<16x256xf32>
    %c17_i32_114 = arith.constant 17 : i32
    %278 = tpu.dynamic_rotate %277 by %c17_i32_114 dim 1 : vector<16x256xf32>, i32 -> vector<16x256xf32>
    %c16_i32_115 = arith.constant 16 : i32
    %279 = vector.broadcast %c16_i32_115 : i32 to vector<1x256xi32>
    %280 = arith.cmpi sge, %0, %279 : vector<1x256xi32>
    %c1_i32_116 = arith.constant 1 : i32
    %281 = vector.broadcast %c1_i32_116 : i32 to vector<1x256xi32>
    %282 = arith.cmpi sge, %1, %281 : vector<1x256xi32>
    %283 = arith.andi %280, %282 : vector<1x256xi1>
    %cst_117 = arith.constant 0.000000e+00 : f32
    %284 = vector.shape_cast %283 : vector<1x256xi1> to vector<1x256xi1>
    %285 = vector.broadcast %284 : vector<1x256xi1> to vector<16x256xi1>
    %286 = vector.broadcast %cst_117 : f32 to vector<16x256xf32>
    %287 = arith.select %285, %278, %286 : vector<16x256xi1>, vector<16x256xf32>
    %288 = arith.truncf %287 : vector<16x256xf32> to vector<16x256xbf16>
    %c16_i32_118 = arith.constant 16 : i32
    %289 = tpu.dynamic_rotate %277 by %c16_i32_118 dim 1 : vector<16x256xf32>, i32 -> vector<16x256xf32>
    %c16_i32_119 = arith.constant 16 : i32
    %290 = vector.broadcast %c16_i32_119 : i32 to vector<1x256xi32>
    %291 = arith.cmpi sge, %0, %290 : vector<1x256xi32>
    %cst_120 = arith.constant 0.000000e+00 : f32
    %292 = vector.shape_cast %291 : vector<1x256xi1> to vector<1x256xi1>
    %293 = vector.broadcast %292 : vector<1x256xi1> to vector<16x256xi1>
    %294 = vector.broadcast %cst_120 : f32 to vector<16x256xf32>
    %295 = arith.select %293, %289, %294 : vector<16x256xi1>, vector<16x256xf32>
    %296 = arith.truncf %295 : vector<16x256xf32> to vector<16x256xbf16>
    %c15_i32_121 = arith.constant 15 : i32
    %297 = tpu.dynamic_rotate %277 by %c15_i32_121 dim 1 : vector<16x256xf32>, i32 -> vector<16x256xf32>
    %c16_i32_122 = arith.constant 16 : i32
    %298 = vector.broadcast %c16_i32_122 : i32 to vector<1x256xi32>
    %299 = arith.cmpi sge, %0, %298 : vector<1x256xi32>
    %c14_i32_123 = arith.constant 14 : i32
    %300 = vector.broadcast %c14_i32_123 : i32 to vector<1x256xi32>
    %301 = arith.cmpi sle, %1, %300 : vector<1x256xi32>
    %302 = arith.andi %299, %301 : vector<1x256xi1>
    %cst_124 = arith.constant 0.000000e+00 : f32
    %303 = vector.shape_cast %302 : vector<1x256xi1> to vector<1x256xi1>
    %304 = vector.broadcast %303 : vector<1x256xi1> to vector<16x256xi1>
    %305 = vector.broadcast %cst_124 : f32 to vector<16x256xf32>
    %306 = arith.select %304, %297, %305 : vector<16x256xi1>, vector<16x256xf32>
    %307 = arith.truncf %306 : vector<16x256xf32> to vector<16x256xbf16>
    %c1_i32_125 = arith.constant 1 : i32
    %308 = tpu.dynamic_rotate %277 by %c1_i32_125 dim 1 : vector<16x256xf32>, i32 -> vector<16x256xf32>
    %c1_i32_126 = arith.constant 1 : i32
    %309 = vector.broadcast %c1_i32_126 : i32 to vector<1x256xi32>
    %310 = arith.cmpi sge, %1, %309 : vector<1x256xi32>
    %cst_127 = arith.constant 0.000000e+00 : f32
    %311 = vector.shape_cast %310 : vector<1x256xi1> to vector<1x256xi1>
    %312 = vector.broadcast %311 : vector<1x256xi1> to vector<16x256xi1>
    %313 = vector.broadcast %cst_127 : f32 to vector<16x256xf32>
    %314 = arith.select %312, %308, %313 : vector<16x256xi1>, vector<16x256xf32>
    %315 = arith.truncf %314 : vector<16x256xf32> to vector<16x256xbf16>
    %316 = arith.truncf %277 : vector<16x256xf32> to vector<16x256xbf16>
    %c255_i32_128 = arith.constant 255 : i32
    %317 = tpu.dynamic_rotate %277 by %c255_i32_128 dim 1 : vector<16x256xf32>, i32 -> vector<16x256xf32>
    %c14_i32_129 = arith.constant 14 : i32
    %318 = vector.broadcast %c14_i32_129 : i32 to vector<1x256xi32>
    %319 = arith.cmpi sle, %1, %318 : vector<1x256xi32>
    %cst_130 = arith.constant 0.000000e+00 : f32
    %320 = vector.shape_cast %319 : vector<1x256xi1> to vector<1x256xi1>
    %321 = vector.broadcast %320 : vector<1x256xi1> to vector<16x256xi1>
    %322 = vector.broadcast %cst_130 : f32 to vector<16x256xf32>
    %323 = arith.select %321, %317, %322 : vector<16x256xi1>, vector<16x256xf32>
    %324 = arith.truncf %323 : vector<16x256xf32> to vector<16x256xbf16>
    %c241_i32_131 = arith.constant 241 : i32
    %325 = tpu.dynamic_rotate %277 by %c241_i32_131 dim 1 : vector<16x256xf32>, i32 -> vector<16x256xf32>
    %c240_i32_132 = arith.constant 240 : i32
    %326 = vector.broadcast %c240_i32_132 : i32 to vector<1x256xi32>
    %327 = arith.cmpi slt, %0, %326 : vector<1x256xi32>
    %c1_i32_133 = arith.constant 1 : i32
    %328 = vector.broadcast %c1_i32_133 : i32 to vector<1x256xi32>
    %329 = arith.cmpi sge, %1, %328 : vector<1x256xi32>
    %330 = arith.andi %327, %329 : vector<1x256xi1>
    %cst_134 = arith.constant 0.000000e+00 : f32
    %331 = vector.shape_cast %330 : vector<1x256xi1> to vector<1x256xi1>
    %332 = vector.broadcast %331 : vector<1x256xi1> to vector<16x256xi1>
    %333 = vector.broadcast %cst_134 : f32 to vector<16x256xf32>
    %334 = arith.select %332, %325, %333 : vector<16x256xi1>, vector<16x256xf32>
    %335 = arith.truncf %334 : vector<16x256xf32> to vector<16x256xbf16>
    %c240_i32_135 = arith.constant 240 : i32
    %336 = tpu.dynamic_rotate %277 by %c240_i32_135 dim 1 : vector<16x256xf32>, i32 -> vector<16x256xf32>
    %c240_i32_136 = arith.constant 240 : i32
    %337 = vector.broadcast %c240_i32_136 : i32 to vector<1x256xi32>
    %338 = arith.cmpi slt, %0, %337 : vector<1x256xi32>
    %cst_137 = arith.constant 0.000000e+00 : f32
    %339 = vector.shape_cast %338 : vector<1x256xi1> to vector<1x256xi1>
    %340 = vector.broadcast %339 : vector<1x256xi1> to vector<16x256xi1>
    %341 = vector.broadcast %cst_137 : f32 to vector<16x256xf32>
    %342 = arith.select %340, %336, %341 : vector<16x256xi1>, vector<16x256xf32>
    %343 = arith.truncf %342 : vector<16x256xf32> to vector<16x256xbf16>
    %c239_i32_138 = arith.constant 239 : i32
    %344 = tpu.dynamic_rotate %277 by %c239_i32_138 dim 1 : vector<16x256xf32>, i32 -> vector<16x256xf32>
    %c240_i32_139 = arith.constant 240 : i32
    %345 = vector.broadcast %c240_i32_139 : i32 to vector<1x256xi32>
    %346 = arith.cmpi slt, %0, %345 : vector<1x256xi32>
    %c14_i32_140 = arith.constant 14 : i32
    %347 = vector.broadcast %c14_i32_140 : i32 to vector<1x256xi32>
    %348 = arith.cmpi sle, %1, %347 : vector<1x256xi32>
    %349 = arith.andi %346, %348 : vector<1x256xi1>
    %cst_141 = arith.constant 0.000000e+00 : f32
    %350 = vector.shape_cast %349 : vector<1x256xi1> to vector<1x256xi1>
    %351 = vector.broadcast %350 : vector<1x256xi1> to vector<16x256xi1>
    %352 = vector.broadcast %cst_141 : f32 to vector<16x256xf32>
    %353 = arith.select %351, %344, %352 : vector<16x256xi1>, vector<16x256xf32>
    %354 = arith.truncf %353 : vector<16x256xf32> to vector<16x256xbf16>
    %355 = tpu.concatenate %288, %296, %307, %315, %316, %324, %335, %343, %354 in 0 : vector<16x256xbf16>, vector<16x256xbf16>, vector<16x256xbf16>, vector<16x256xbf16>, vector<16x256xbf16>, vector<16x256xbf16>, vector<16x256xbf16>, vector<16x256xbf16>, vector<16x256xbf16> -> vector<144x256xbf16>
    %c0_142 = arith.constant 0 : index
    %c0_143 = arith.constant 0 : index
    %356 = vector.load %arg7[%c0_142, %c0_143] : memref<16x144xbf16, #tpu.memory_space<vmem>>, vector<16x144xbf16>
    %cst_144 = arith.constant dense<0.000000e+00> : vector<16x256xf32>
    %357 = tpu.matmul %356, %355, %cst_144 {dimension_numbers = #tpu.dot_dimension_numbers<[1], [0], [0], [1], [0, 0, 1, 1], [], []>} : vector<16x144xbf16>, vector<144x256xbf16>, vector<16x256xf32> -> vector<16x256xf32>
    %cst_145 = arith.constant 0.000000e+00 : f32
    %358 = vector.broadcast %cst_145 : f32 to vector<16x256xf32>
    %359 = arith.maximumf %357, %358 : vector<16x256xf32>
    %c17_i32_146 = arith.constant 17 : i32
    %360 = tpu.dynamic_rotate %359 by %c17_i32_146 dim 1 : vector<16x256xf32>, i32 -> vector<16x256xf32>
    %c16_i32_147 = arith.constant 16 : i32
    %361 = vector.broadcast %c16_i32_147 : i32 to vector<1x256xi32>
    %362 = arith.cmpi sge, %0, %361 : vector<1x256xi32>
    %c1_i32_148 = arith.constant 1 : i32
    %363 = vector.broadcast %c1_i32_148 : i32 to vector<1x256xi32>
    %364 = arith.cmpi sge, %1, %363 : vector<1x256xi32>
    %365 = arith.andi %362, %364 : vector<1x256xi1>
    %cst_149 = arith.constant 0.000000e+00 : f32
    %366 = vector.shape_cast %365 : vector<1x256xi1> to vector<1x256xi1>
    %367 = vector.broadcast %366 : vector<1x256xi1> to vector<16x256xi1>
    %368 = vector.broadcast %cst_149 : f32 to vector<16x256xf32>
    %369 = arith.select %367, %360, %368 : vector<16x256xi1>, vector<16x256xf32>
    %370 = arith.truncf %369 : vector<16x256xf32> to vector<16x256xbf16>
    %c16_i32_150 = arith.constant 16 : i32
    %371 = tpu.dynamic_rotate %359 by %c16_i32_150 dim 1 : vector<16x256xf32>, i32 -> vector<16x256xf32>
    %c16_i32_151 = arith.constant 16 : i32
    %372 = vector.broadcast %c16_i32_151 : i32 to vector<1x256xi32>
    %373 = arith.cmpi sge, %0, %372 : vector<1x256xi32>
    %cst_152 = arith.constant 0.000000e+00 : f32
    %374 = vector.shape_cast %373 : vector<1x256xi1> to vector<1x256xi1>
    %375 = vector.broadcast %374 : vector<1x256xi1> to vector<16x256xi1>
    %376 = vector.broadcast %cst_152 : f32 to vector<16x256xf32>
    %377 = arith.select %375, %371, %376 : vector<16x256xi1>, vector<16x256xf32>
    %378 = arith.truncf %377 : vector<16x256xf32> to vector<16x256xbf16>
    %c15_i32_153 = arith.constant 15 : i32
    %379 = tpu.dynamic_rotate %359 by %c15_i32_153 dim 1 : vector<16x256xf32>, i32 -> vector<16x256xf32>
    %c16_i32_154 = arith.constant 16 : i32
    %380 = vector.broadcast %c16_i32_154 : i32 to vector<1x256xi32>
    %381 = arith.cmpi sge, %0, %380 : vector<1x256xi32>
    %c14_i32_155 = arith.constant 14 : i32
    %382 = vector.broadcast %c14_i32_155 : i32 to vector<1x256xi32>
    %383 = arith.cmpi sle, %1, %382 : vector<1x256xi32>
    %384 = arith.andi %381, %383 : vector<1x256xi1>
    %cst_156 = arith.constant 0.000000e+00 : f32
    %385 = vector.shape_cast %384 : vector<1x256xi1> to vector<1x256xi1>
    %386 = vector.broadcast %385 : vector<1x256xi1> to vector<16x256xi1>
    %387 = vector.broadcast %cst_156 : f32 to vector<16x256xf32>
    %388 = arith.select %386, %379, %387 : vector<16x256xi1>, vector<16x256xf32>
    %389 = arith.truncf %388 : vector<16x256xf32> to vector<16x256xbf16>
    %c1_i32_157 = arith.constant 1 : i32
    %390 = tpu.dynamic_rotate %359 by %c1_i32_157 dim 1 : vector<16x256xf32>, i32 -> vector<16x256xf32>
    %c1_i32_158 = arith.constant 1 : i32
    %391 = vector.broadcast %c1_i32_158 : i32 to vector<1x256xi32>
    %392 = arith.cmpi sge, %1, %391 : vector<1x256xi32>
    %cst_159 = arith.constant 0.000000e+00 : f32
    %393 = vector.shape_cast %392 : vector<1x256xi1> to vector<1x256xi1>
    %394 = vector.broadcast %393 : vector<1x256xi1> to vector<16x256xi1>
    %395 = vector.broadcast %cst_159 : f32 to vector<16x256xf32>
    %396 = arith.select %394, %390, %395 : vector<16x256xi1>, vector<16x256xf32>
    %397 = arith.truncf %396 : vector<16x256xf32> to vector<16x256xbf16>
    %398 = arith.truncf %359 : vector<16x256xf32> to vector<16x256xbf16>
    %c255_i32_160 = arith.constant 255 : i32
    %399 = tpu.dynamic_rotate %359 by %c255_i32_160 dim 1 : vector<16x256xf32>, i32 -> vector<16x256xf32>
    %c14_i32_161 = arith.constant 14 : i32
    %400 = vector.broadcast %c14_i32_161 : i32 to vector<1x256xi32>
    %401 = arith.cmpi sle, %1, %400 : vector<1x256xi32>
    %cst_162 = arith.constant 0.000000e+00 : f32
    %402 = vector.shape_cast %401 : vector<1x256xi1> to vector<1x256xi1>
    %403 = vector.broadcast %402 : vector<1x256xi1> to vector<16x256xi1>
    %404 = vector.broadcast %cst_162 : f32 to vector<16x256xf32>
    %405 = arith.select %403, %399, %404 : vector<16x256xi1>, vector<16x256xf32>
    %406 = arith.truncf %405 : vector<16x256xf32> to vector<16x256xbf16>
    %c241_i32_163 = arith.constant 241 : i32
    %407 = tpu.dynamic_rotate %359 by %c241_i32_163 dim 1 : vector<16x256xf32>, i32 -> vector<16x256xf32>
    %c240_i32_164 = arith.constant 240 : i32
    %408 = vector.broadcast %c240_i32_164 : i32 to vector<1x256xi32>
    %409 = arith.cmpi slt, %0, %408 : vector<1x256xi32>
    %c1_i32_165 = arith.constant 1 : i32
    %410 = vector.broadcast %c1_i32_165 : i32 to vector<1x256xi32>
    %411 = arith.cmpi sge, %1, %410 : vector<1x256xi32>
    %412 = arith.andi %409, %411 : vector<1x256xi1>
    %cst_166 = arith.constant 0.000000e+00 : f32
    %413 = vector.shape_cast %412 : vector<1x256xi1> to vector<1x256xi1>
    %414 = vector.broadcast %413 : vector<1x256xi1> to vector<16x256xi1>
    %415 = vector.broadcast %cst_166 : f32 to vector<16x256xf32>
    %416 = arith.select %414, %407, %415 : vector<16x256xi1>, vector<16x256xf32>
    %417 = arith.truncf %416 : vector<16x256xf32> to vector<16x256xbf16>
    %c240_i32_167 = arith.constant 240 : i32
    %418 = tpu.dynamic_rotate %359 by %c240_i32_167 dim 1 : vector<16x256xf32>, i32 -> vector<16x256xf32>
    %c240_i32_168 = arith.constant 240 : i32
    %419 = vector.broadcast %c240_i32_168 : i32 to vector<1x256xi32>
    %420 = arith.cmpi slt, %0, %419 : vector<1x256xi32>
    %cst_169 = arith.constant 0.000000e+00 : f32
    %421 = vector.shape_cast %420 : vector<1x256xi1> to vector<1x256xi1>
    %422 = vector.broadcast %421 : vector<1x256xi1> to vector<16x256xi1>
    %423 = vector.broadcast %cst_169 : f32 to vector<16x256xf32>
    %424 = arith.select %422, %418, %423 : vector<16x256xi1>, vector<16x256xf32>
    %425 = arith.truncf %424 : vector<16x256xf32> to vector<16x256xbf16>
    %c239_i32_170 = arith.constant 239 : i32
    %426 = tpu.dynamic_rotate %359 by %c239_i32_170 dim 1 : vector<16x256xf32>, i32 -> vector<16x256xf32>
    %c240_i32_171 = arith.constant 240 : i32
    %427 = vector.broadcast %c240_i32_171 : i32 to vector<1x256xi32>
    %428 = arith.cmpi slt, %0, %427 : vector<1x256xi32>
    %c14_i32_172 = arith.constant 14 : i32
    %429 = vector.broadcast %c14_i32_172 : i32 to vector<1x256xi32>
    %430 = arith.cmpi sle, %1, %429 : vector<1x256xi32>
    %431 = arith.andi %428, %430 : vector<1x256xi1>
    %cst_173 = arith.constant 0.000000e+00 : f32
    %432 = vector.shape_cast %431 : vector<1x256xi1> to vector<1x256xi1>
    %433 = vector.broadcast %432 : vector<1x256xi1> to vector<16x256xi1>
    %434 = vector.broadcast %cst_173 : f32 to vector<16x256xf32>
    %435 = arith.select %433, %426, %434 : vector<16x256xi1>, vector<16x256xf32>
    %436 = arith.truncf %435 : vector<16x256xf32> to vector<16x256xbf16>
    %437 = tpu.concatenate %370, %378, %389, %397, %398, %406, %417, %425, %436 in 0 : vector<16x256xbf16>, vector<16x256xbf16>, vector<16x256xbf16>, vector<16x256xbf16>, vector<16x256xbf16>, vector<16x256xbf16>, vector<16x256xbf16>, vector<16x256xbf16>, vector<16x256xbf16> -> vector<144x256xbf16>
    %c0_174 = arith.constant 0 : index
    %c0_175 = arith.constant 0 : index
    %438 = vector.load %arg8[%c0_174, %c0_175] : memref<16x144xbf16, #tpu.memory_space<vmem>>, vector<16x144xbf16>
    %cst_176 = arith.constant dense<0.000000e+00> : vector<16x256xf32>
    %439 = tpu.matmul %438, %437, %cst_176 {dimension_numbers = #tpu.dot_dimension_numbers<[1], [0], [0], [1], [0, 0, 1, 1], [], []>} : vector<16x144xbf16>, vector<144x256xbf16>, vector<16x256xf32> -> vector<16x256xf32>
    %440 = arith.addf %439, %277 : vector<16x256xf32>
    %c17_i32_177 = arith.constant 17 : i32
    %441 = tpu.dynamic_rotate %440 by %c17_i32_177 dim 1 : vector<16x256xf32>, i32 -> vector<16x256xf32>
    %c16_i32_178 = arith.constant 16 : i32
    %442 = vector.broadcast %c16_i32_178 : i32 to vector<1x256xi32>
    %443 = arith.cmpi sge, %0, %442 : vector<1x256xi32>
    %c1_i32_179 = arith.constant 1 : i32
    %444 = vector.broadcast %c1_i32_179 : i32 to vector<1x256xi32>
    %445 = arith.cmpi sge, %1, %444 : vector<1x256xi32>
    %446 = arith.andi %443, %445 : vector<1x256xi1>
    %cst_180 = arith.constant 0.000000e+00 : f32
    %447 = vector.shape_cast %446 : vector<1x256xi1> to vector<1x256xi1>
    %448 = vector.broadcast %447 : vector<1x256xi1> to vector<16x256xi1>
    %449 = vector.broadcast %cst_180 : f32 to vector<16x256xf32>
    %450 = arith.select %448, %441, %449 : vector<16x256xi1>, vector<16x256xf32>
    %451 = arith.truncf %450 : vector<16x256xf32> to vector<16x256xbf16>
    %c16_i32_181 = arith.constant 16 : i32
    %452 = tpu.dynamic_rotate %440 by %c16_i32_181 dim 1 : vector<16x256xf32>, i32 -> vector<16x256xf32>
    %c16_i32_182 = arith.constant 16 : i32
    %453 = vector.broadcast %c16_i32_182 : i32 to vector<1x256xi32>
    %454 = arith.cmpi sge, %0, %453 : vector<1x256xi32>
    %cst_183 = arith.constant 0.000000e+00 : f32
    %455 = vector.shape_cast %454 : vector<1x256xi1> to vector<1x256xi1>
    %456 = vector.broadcast %455 : vector<1x256xi1> to vector<16x256xi1>
    %457 = vector.broadcast %cst_183 : f32 to vector<16x256xf32>
    %458 = arith.select %456, %452, %457 : vector<16x256xi1>, vector<16x256xf32>
    %459 = arith.truncf %458 : vector<16x256xf32> to vector<16x256xbf16>
    %c15_i32_184 = arith.constant 15 : i32
    %460 = tpu.dynamic_rotate %440 by %c15_i32_184 dim 1 : vector<16x256xf32>, i32 -> vector<16x256xf32>
    %c16_i32_185 = arith.constant 16 : i32
    %461 = vector.broadcast %c16_i32_185 : i32 to vector<1x256xi32>
    %462 = arith.cmpi sge, %0, %461 : vector<1x256xi32>
    %c14_i32_186 = arith.constant 14 : i32
    %463 = vector.broadcast %c14_i32_186 : i32 to vector<1x256xi32>
    %464 = arith.cmpi sle, %1, %463 : vector<1x256xi32>
    %465 = arith.andi %462, %464 : vector<1x256xi1>
    %cst_187 = arith.constant 0.000000e+00 : f32
    %466 = vector.shape_cast %465 : vector<1x256xi1> to vector<1x256xi1>
    %467 = vector.broadcast %466 : vector<1x256xi1> to vector<16x256xi1>
    %468 = vector.broadcast %cst_187 : f32 to vector<16x256xf32>
    %469 = arith.select %467, %460, %468 : vector<16x256xi1>, vector<16x256xf32>
    %470 = arith.truncf %469 : vector<16x256xf32> to vector<16x256xbf16>
    %c1_i32_188 = arith.constant 1 : i32
    %471 = tpu.dynamic_rotate %440 by %c1_i32_188 dim 1 : vector<16x256xf32>, i32 -> vector<16x256xf32>
    %c1_i32_189 = arith.constant 1 : i32
    %472 = vector.broadcast %c1_i32_189 : i32 to vector<1x256xi32>
    %473 = arith.cmpi sge, %1, %472 : vector<1x256xi32>
    %cst_190 = arith.constant 0.000000e+00 : f32
    %474 = vector.shape_cast %473 : vector<1x256xi1> to vector<1x256xi1>
    %475 = vector.broadcast %474 : vector<1x256xi1> to vector<16x256xi1>
    %476 = vector.broadcast %cst_190 : f32 to vector<16x256xf32>
    %477 = arith.select %475, %471, %476 : vector<16x256xi1>, vector<16x256xf32>
    %478 = arith.truncf %477 : vector<16x256xf32> to vector<16x256xbf16>
    %479 = arith.truncf %440 : vector<16x256xf32> to vector<16x256xbf16>
    %c255_i32_191 = arith.constant 255 : i32
    %480 = tpu.dynamic_rotate %440 by %c255_i32_191 dim 1 : vector<16x256xf32>, i32 -> vector<16x256xf32>
    %c14_i32_192 = arith.constant 14 : i32
    %481 = vector.broadcast %c14_i32_192 : i32 to vector<1x256xi32>
    %482 = arith.cmpi sle, %1, %481 : vector<1x256xi32>
    %cst_193 = arith.constant 0.000000e+00 : f32
    %483 = vector.shape_cast %482 : vector<1x256xi1> to vector<1x256xi1>
    %484 = vector.broadcast %483 : vector<1x256xi1> to vector<16x256xi1>
    %485 = vector.broadcast %cst_193 : f32 to vector<16x256xf32>
    %486 = arith.select %484, %480, %485 : vector<16x256xi1>, vector<16x256xf32>
    %487 = arith.truncf %486 : vector<16x256xf32> to vector<16x256xbf16>
    %c241_i32_194 = arith.constant 241 : i32
    %488 = tpu.dynamic_rotate %440 by %c241_i32_194 dim 1 : vector<16x256xf32>, i32 -> vector<16x256xf32>
    %c240_i32_195 = arith.constant 240 : i32
    %489 = vector.broadcast %c240_i32_195 : i32 to vector<1x256xi32>
    %490 = arith.cmpi slt, %0, %489 : vector<1x256xi32>
    %c1_i32_196 = arith.constant 1 : i32
    %491 = vector.broadcast %c1_i32_196 : i32 to vector<1x256xi32>
    %492 = arith.cmpi sge, %1, %491 : vector<1x256xi32>
    %493 = arith.andi %490, %492 : vector<1x256xi1>
    %cst_197 = arith.constant 0.000000e+00 : f32
    %494 = vector.shape_cast %493 : vector<1x256xi1> to vector<1x256xi1>
    %495 = vector.broadcast %494 : vector<1x256xi1> to vector<16x256xi1>
    %496 = vector.broadcast %cst_197 : f32 to vector<16x256xf32>
    %497 = arith.select %495, %488, %496 : vector<16x256xi1>, vector<16x256xf32>
    %498 = arith.truncf %497 : vector<16x256xf32> to vector<16x256xbf16>
    %c240_i32_198 = arith.constant 240 : i32
    %499 = tpu.dynamic_rotate %440 by %c240_i32_198 dim 1 : vector<16x256xf32>, i32 -> vector<16x256xf32>
    %c240_i32_199 = arith.constant 240 : i32
    %500 = vector.broadcast %c240_i32_199 : i32 to vector<1x256xi32>
    %501 = arith.cmpi slt, %0, %500 : vector<1x256xi32>
    %cst_200 = arith.constant 0.000000e+00 : f32
    %502 = vector.shape_cast %501 : vector<1x256xi1> to vector<1x256xi1>
    %503 = vector.broadcast %502 : vector<1x256xi1> to vector<16x256xi1>
    %504 = vector.broadcast %cst_200 : f32 to vector<16x256xf32>
    %505 = arith.select %503, %499, %504 : vector<16x256xi1>, vector<16x256xf32>
    %506 = arith.truncf %505 : vector<16x256xf32> to vector<16x256xbf16>
    %c239_i32_201 = arith.constant 239 : i32
    %507 = tpu.dynamic_rotate %440 by %c239_i32_201 dim 1 : vector<16x256xf32>, i32 -> vector<16x256xf32>
    %c240_i32_202 = arith.constant 240 : i32
    %508 = vector.broadcast %c240_i32_202 : i32 to vector<1x256xi32>
    %509 = arith.cmpi slt, %0, %508 : vector<1x256xi32>
    %c14_i32_203 = arith.constant 14 : i32
    %510 = vector.broadcast %c14_i32_203 : i32 to vector<1x256xi32>
    %511 = arith.cmpi sle, %1, %510 : vector<1x256xi32>
    %512 = arith.andi %509, %511 : vector<1x256xi1>
    %cst_204 = arith.constant 0.000000e+00 : f32
    %513 = vector.shape_cast %512 : vector<1x256xi1> to vector<1x256xi1>
    %514 = vector.broadcast %513 : vector<1x256xi1> to vector<16x256xi1>
    %515 = vector.broadcast %cst_204 : f32 to vector<16x256xf32>
    %516 = arith.select %514, %507, %515 : vector<16x256xi1>, vector<16x256xf32>
    %517 = arith.truncf %516 : vector<16x256xf32> to vector<16x256xbf16>
    %518 = tpu.concatenate %451, %459, %470, %478, %479, %487, %498, %506, %517 in 0 : vector<16x256xbf16>, vector<16x256xbf16>, vector<16x256xbf16>, vector<16x256xbf16>, vector<16x256xbf16>, vector<16x256xbf16>, vector<16x256xbf16>, vector<16x256xbf16>, vector<16x256xbf16> -> vector<144x256xbf16>
    %c0_205 = arith.constant 0 : index
    %c0_206 = arith.constant 0 : index
    %519 = vector.load %arg9[%c0_205, %c0_206] : memref<1x144xbf16, #tpu.memory_space<vmem>>, vector<1x144xbf16>
    %cst_207 = arith.constant dense<0.000000e+00> : vector<1x256xf32>
    %520 = tpu.matmul %519, %518, %cst_207 {dimension_numbers = #tpu.dot_dimension_numbers<[1], [0], [0], [1], [0, 0, 1, 1], [], []>} : vector<1x144xbf16>, vector<144x256xbf16>, vector<1x256xf32> -> vector<1x256xf32>
    %c0_208 = arith.constant 0 : index
    %c0_209 = arith.constant 0 : index
    %521 = vector.load %arg10[%c0_208, %c0_209] : memref<1x256xf32, #tpu.memory_space<vmem>>, vector<1x256xf32>
    tpu.vector_store %arg10[%c0_208, %c0_209], %520 {strides = array<i32>} : memref<1x256xf32, #tpu.memory_space<vmem>>, vector<1x256xf32>,
    return
  }
  func.func @transform_0(%arg0: i32) -> (i32, i32) {
    %c0_i32 = arith.constant 0 : i32
    %c0_i32_0 = arith.constant 0 : i32
    %c0_i32_1 = arith.constant 0 : i32
    return %c0_i32, %c0_i32_0 : i32, i32
  }
  func.func @transform_1(%arg0: i32) -> (i32, i32) {
    %c0_i32 = arith.constant 0 : i32
    %c0_i32_0 = arith.constant 0 : i32
    %c0_i32_1 = arith.constant 0 : i32
    return %c0_i32, %c0_i32_0 : i32, i32
  }
  func.func @transform_2(%arg0: i32) -> (i32, i32) {
    %c0_i32 = arith.constant 0 : i32
    %c0_i32_0 = arith.constant 0 : i32
    %c0_i32_1 = arith.constant 0 : i32
    return %c0_i32, %c0_i32_0 : i32, i32
  }
  func.func @transform_3(%arg0: i32) -> (i32, i32, i32) {
    %c0_i32 = arith.constant 0 : i32
    %c0_i32_0 = arith.constant 0 : i32
    %c0_i32_1 = arith.constant 0 : i32
    %c0_i32_2 = arith.constant 0 : i32
    return %c0_i32, %c0_i32_0, %c0_i32_1 : i32, i32, i32
  }
  func.func @transform_4(%arg0: i32) -> (i32, i32) {
    %c0_i32 = arith.constant 0 : i32
    %c0_i32_0 = arith.constant 0 : i32
    %c0_i32_1 = arith.constant 0 : i32
    return %c0_i32, %c0_i32_0 : i32, i32
  }
  func.func @transform_5(%arg0: i32) -> (i32, i32) {
    %c0_i32 = arith.constant 0 : i32
    %c0_i32_0 = arith.constant 0 : i32
    %c0_i32_1 = arith.constant 0 : i32
    return %c0_i32, %c0_i32_0 : i32, i32
  }
  func.func @transform_6(%arg0: i32) -> (i32, i32) {
    %c0_i32 = arith.constant 0 : i32
    %c0_i32_0 = arith.constant 0 : i32
    %c0_i32_1 = arith.constant 0 : i32
    return %c0_i32, %c0_i32_0 : i32, i32
  }
  func.func @transform_7(%arg0: i32) -> (i32, i32) {
    %c0_i32 = arith.constant 0 : i32
    %c0_i32_0 = arith.constant 0 : i32
    %c0_i32_1 = arith.constant 0 : i32
    return %c0_i32, %c0_i32_0 : i32, i32
  }
  func.func @transform_8(%arg0: i32) -> (i32, i32) {
    %c0_i32 = arith.constant 0 : i32
    %c0_i32_0 = arith.constant 0 : i32
    %c0_i32_1 = arith.constant 0 : i32
    return %c0_i32, %c0_i32_0 : i32, i32
  }
  func.func @transform_9(%arg0: i32) -> (i32, i32) {
    %c0_i32 = arith.constant 0 : i32
    %c0_i32_0 = arith.constant 0 : i32
    %c0_i32_1 = arith.constant 0 : i32
    return %c0_i32, %c0_i32_0 : i32, i32
  }
}

</mosaic_0001>

<bundles_post_ra>
// kernel: tpu_custom_call.1
= control target key start
LH: loop header
LB: loop body
LE: loop exit
PB: predicated region body
PF: predicated region fallthrough
CT: control target
= control target key end

     0   :  { %s4109_s0 = inlined_call_operand.<no memory space> [shape: f32[1,1], index: 0, kind: input, shape index: {}]   ;;  %s4110_s1 = inlined_call_operand.vmem [shape: f32[1,256], index: 1, kind: input, shape index: {}]   ;;  %s4111_s2 = inlined_call_operand.vmem [shape: s32[1,256], index: 2, kind: input, shape index: {}]   ;;  %s4112_s3 = inlined_call_operand.vmem [shape: f32[9,16,2], index: 3, kind: input, shape index: {}]   ;;  %s4113_s4 = inlined_call_operand.vmem [shape: bf16[16,144], index: 4, kind: input, shape index: {}]   ;;  %s4114_s5 = inlined_call_operand.vmem [shape: bf16[16,144], index: 5, kind: input, shape index: {}]   ;;  %s4115_s6 = inlined_call_operand.vmem [shape: bf16[16,144], index: 6, kind: input, shape index: {}]   ;;  %s4116_s7 = inlined_call_operand.vmem [shape: bf16[16,144], index: 7, kind: input, shape index: {}]   ;;  %s4117_s8 = inlined_call_operand.vmem [shape: bf16[1,144], index: 8, kind: input, shape index: {}]   ;;  %s4118_s9 = inlined_call_operand.hbm [shape: f32[1,256], index: 9, kind: output, shape index: {}]  }
   0x1   :  { %v14_v0 = vstv %s4109_s0 }
   0x2   :  { %15 = vst [vmem:[#allocation2] sm:$0x1] %v14_v0 }
   0x9   :  { %v40_v1 = vld [vmem:[#allocation2] sm:$0x1] }
   0xa   :  { %2466 = vpush %v40_v1 }
   0xb   :  { %16 = vsyncpa [#allocation4], 0  ;;  %v36_v2 = vlaneseq  ;;  %v39_v4 = vld [vmem:[%s4111_s2] sm:$0x3]  ;;  %v2916_v6 = vmov 0   ;;  %v2917_v17 = vmov 0.0  }
   0xc   :  { %vm302_vm0 = vcmp.le.s32.totalorder %v39_v4, 14  ;;  %vm69_vm2 = vcmp.ge.s32.totalorder %v39_v4, 1  ;;  %v45_v14 = vld [vmem:[%s4110_s1] sm:$0x3]  ;;  %409 = vmatprep.mubr.f32.mxu0 %v2917_v17  ;;  %193 = vmatprep.mubr.f32.mxu1 %v2917_v17  ;;  %s2918_s1 = smov 1   ;;  %s2919_s14 = smov 15  }
   0xd   :  { %v2982_v3 = vshrl.u32 %v36_v2, 7  ;;  %v303_v7 = vsel %vm302_vm0, 1, %v2916_v6  ;;  %v3000_v12 = vand.u32 127, %v36_v2  ;;  %v70_v13 = vsel %vm69_vm2, 1, %v2916_v6  ;;  %s2920_s15 = smov 127   ;;  %s2921_s16 = smov 113  }
   0xe   :  { %s2922_s17 = smov 112   ;;  %s2923_s18 = smov 16   ;;  %vm122_vm0 = vcmask 1041408   ;;  %vm115_vm2 = vcmask 15360   ;;  %v2168_v45 = vld [vmem:[%s4112_s3 + $0x20] sm:$0xff]  ;;  %v2169_v50 = vld [vmem:[%s4112_s3 + $0x28] sm:$0xff] }
   0xf   :  { %v53_v5 = vsub.s32 1, %v2982_v3  ;;  %v2992_v9 = vsub.s32 0, %v2982_v3  ;;  %v3007_v15 = vadd.s32 128, %v3000_v12  ;;  %vm44_vm3 = vcmp.eq.s32.totalorder %v2982_v3, 0  ;;  %s2924_s19 = smov 17   ;;  %s2925_s20 = smov 111  }
  0x10   :  { %vm67_vm8 = vcmp.ge.s32.totalorder %v3000_v12, 16  ;;  %vm4128_vm11 = vcmp.lt.s32.totalorder %v3000_v12, 15  ;;  %vm4122_vm12 = vcmp.lt.s32.totalorder %v3000_v12, 1  ;;  %v2174_v53 = vld [vmem:[%s4112_s3 + $0x30] sm:$0xff]  ;;  %v2175_v59 = vld [vmem:[%s4112_s3 + $0x38] sm:$0xff]  ;;  %v4169_v36 = vmov 0 }
  0x11   :  { %v2989_v8 = vrot.slane %v303_v7, %v53_v5  ;;  %v3009_v16 = vrot.slane %v70_v13, %v53_v5  ;;  %v50_v18 = vrot.slane %v45_v14, %v2992_v9  ;;  %vm4126_vm4 = vcmp.lt.s32.totalorder %v3007_v15, 240  ;;  %v2158_v1 = vld [vmem:[%s4112_s3 + $0x10] sm:$0xff] }
  0x12   :  { %v54_v20 = vrot.slane %v45_v14, %v53_v5  ;;  %v3079_v29 = vrot.slane %v303_v7, %v2992_v9  ;;  %v3090_v34 = vrot.slane %v70_v13, %v2992_v9 }
  0x13   :  { %vm313_vm1 = vcmp.ne.s32.totalorder %v2989_v8, 0  ;;  %vm80_vm5 = vcmp.ne.s32.totalorder %v3009_v16, 0 }
  0x14   :  { %v317_v10 = vsel %vm313_vm1, 1, %v2916_v6  ;;  %vm746_vm6 = vmand %vm4126_vm4, %vm80_vm5  ;;  %v3045_v25 = vsel %vm80_vm5, 1, %v2916_v6  ;;  %vm312_vm9 = vcmp.ne.s32.totalorder %v3079_v29, 0  ;;  %vm4119_vm15 = vcmp.eq.s32.totalorder %v3090_v34, 1 }
  0x15   :  { %v325_v11 = vrot.slane %v317_v10, %v2992_v9  ;;  %v3028_v22 = vsel %vm746_vm6, 1, %v2916_v6  ;;  %vm974_vm7 = vmand %vm4126_vm4, %vm313_vm1  ;;  %v92_v26 = vrot.slane %v3045_v25, %v2992_v9  ;;  %vm4124_vm1 = vcmp.eq.s32.totalorder %v3009_v16, 1  ;;  %v2180_v10 = vld [vmem:[%s4112_s3 + $0x40] sm:$0xff] }
  0x16   :  { %v756_v23 = vrot.slane %v3028_v22, %v2992_v9  ;;  %v3058_v27 = vsel %vm974_vm7, 1, %v2916_v6  ;;  %vm314_vm10 = vmand %vm67_vm8, %vm312_vm9  ;;  %vm79_vm5 = vcmp.ne.s32.totalorder %v3090_v34, 0  ;;  %vm4120_vm7 = vcmp.eq.s32.totalorder %v2989_v8, 1 }
  0x17   :  { %v984_v28 = vrot.slane %v3058_v27, %v2992_v9  ;;  %v316_v30 = vsel %vm314_vm10, 1, %v2916_v6  ;;  %vm3094_vm13 = vcmp.eq.s32.totalorder %v325_v11, 1  ;;  %vm81_vm6 = vmand %vm67_vm8, %vm79_vm5  ;;  %vm4129_vm10 = vcmp.lt.s32.totalorder %v3000_v12, 16  ;;  %v2193_v27 = vld [vmem:[%s4112_s3 + $0x68] sm:$0xff] }
  0x18   :  { %v321_v31 = vrot.slane %v316_v30, %v2992_v9  ;;  %v83_v57 = vsel %vm81_vm6, 1, %v2916_v6  ;;  %vm4125_vm6 = vcmp.lt.s32.totalorder %v3000_v12, 113  ;;  %v747_v5 = vsel %vm79_vm5, 1, %v2916_v6 }
  0x19   :  { %v88_v60 = vrot.slane %v83_v57, %v2992_v9  ;;  %vm3204_vm5 = vcmp.eq.s32.totalorder %v92_v26, 1  ;;  %v2205_v57 = vld [vmem:[%s4112_s3 + $0x88] sm:$0xff] }
  0x1a   :  { %vm3098_vm14 = vcmp.eq.s32.totalorder %v321_v31, 1  ;;  %v2181_v31 = vld [vmem:[%s4112_s3 + $0x48] sm:$0xff] }
  0x3b   :  { %s2467_s13 = spop %2466 }
  0x3c   :  { %v57_v19 = vstv %s2467_s13 }
  0x3d   :  { %v3017_v21 = vsel %vm44_vm3, %v50_v18, %v57_v19  ;;  %v3032_v24 = vsel %vm44_vm3, %v54_v20, %v57_v19  ;;  %vm4121_vm3 = vcmp.lt.s32.totalorder %v3000_v12, 127 }
  0x3e   :  { %426 = vrot.lane.b32.xlu1 %v3017_v21, %s2918_s1  ;;  %295 = vrot.lane.b32.xlu0 %v3017_v21, %s2919_s14 }
  0x42   :  { %428 = vrot.lane.b32.xlu1 %v3032_v24, %s2918_s1  ;;  %297 = vrot.lane.b32.xlu0 %v3032_v24, %s2919_s14 }
  0x46   :  { %631 = vrot.lane.b32.xlu1 %v3032_v24, %s2920_s15  ;;  %629 = vrot.lane.b32.xlu0 %v3017_v21, %s2920_s15 }
  0x4a   :  { %738 = vrot.lane.b32.xlu1 %v3032_v24, %s2921_s16  ;;  %736 = vrot.lane.b32.xlu0 %v3017_v21, %s2921_s16 }
  0x4e   :  { %859 = vrot.lane.b32.xlu1 %v3032_v24, %s2922_s17  ;;  %857 = vrot.lane.b32.xlu0 %v3017_v21, %s2922_s17 }
  0x52   :  { %101 = vrot.lane.b32.xlu1 %v3032_v24, %s2923_s18  ;;  %99 = vrot.lane.b32.xlu0 %v3017_v21, %s2923_s18 }
  0x56   :  { %62 = vrot.lane.b32.xlu1 %v3032_v24, %s2924_s19  ;;  %60 = vrot.lane.b32.xlu0 %v3017_v21, %s2924_s19 }
  0x5a   :  { %968 = vrot.lane.b32.xlu1 %v3032_v24, %s2925_s20  ;;  %966 = vrot.lane.b32.xlu0 %v3017_v21, %s2925_s20 }
  0xb0   :  { %v427_v32 = vpop.permute.xlu1 %426  ;;  %v296_v33 = vpop.permute.xlu0 %295 }
  0xb4   :  { %v429_v37 = vpop.permute.xlu1 %428  ;;  %v298_v38 = vpop.permute.xlu0 %297 }
  0xb5   :  { %v431_v39 = vsel %vm4122_vm12, %v427_v32, %v429_v37  ;;  %v301_v40 = vsel %vm4128_vm11, %v298_v38, %v296_v33  ;;  %v300_v41 = vsel %vm4128_vm11, %v296_v33, %v298_v38  ;;  %v432_v42 = vsel %vm4122_vm12, %v429_v37, %v427_v32  ;;  %v2159_v32 = vld [vmem:[%s4112_s3 + $0x18] sm:$0xff]  ;;  %v2186_v38 = vld [vmem:[%s4112_s3 + $0x50] sm:$0xff] }
  0xb6   :  { %v329_v43 = vsel %vm3094_vm13, %v300_v41, 0.0  ;;  %v328_v44 = vsel %vm3098_vm14, %v301_v40, 0.0  ;;  %v436_v46 = vsel %vm4124_vm1, %v431_v39, 0.0  ;;  %v435_v49 = vsel %vm4119_vm15, %v432_v42, 0.0  ;;  %v97_v39 = vld [vmem:[%s4112_s3] sm:$0xff] }
  0xb7   :  { %2170 = vmatprep.subr.msk.mxu0 %vm122_vm0, %v329_v43  ;;  %vm4127_vm15 = vcmp.lt.s32.totalorder %v3000_v12, 17  ;;  %vm3208_vm12 = vcmp.eq.s32.totalorder %v88_v60, 1  ;;  %v2187_v43 = vld [vmem:[%s4112_s3 + $0x58] sm:$0xff] }
  0xb8   :  { %v632_v47 = vpop.permute.xlu1 %631  ;;  %v630_v48 = vpop.permute.xlu0 %629  ;;  %2171 = vmatpush1.msk.msra.mxu0 %vm122_vm0, %v328_v44  ;;  %v98_v44 = vld [vmem:[%s4112_s3 + $0x8] sm:$0xff] }
  0xb9   :  { %2172 = vmatmul.mubr.msk.f32.vlgmr.msra.gmra.mrb[0].mxu0 %vm115_vm2, %v2168_v45  ;;  %2176 = vmatprep.subr.msk.mxu0 %vm122_vm0, %v436_v46  ;;  %v635_v54 = vsel %vm4121_vm3, %v632_v47, %v630_v48  ;;  %v634_v4 = vsel %vm4121_vm3, %v630_v48, %v632_v47  ;;  %vm3196_vm3 = vcmp.eq.s32.totalorder %v756_v23, 1  ;;  %v2192_v47 = vld [vmem:[%s4112_s3 + $0x60] sm:$0xff]  ;;  %v975_v48 = vsel %vm312_vm9, 1, %v2916_v6 }
  0xba   :  { %2177 = vmatpush1.msk.msra.mxu0 %vm122_vm0, %v435_v49  ;;  %415 = vmatprep.mubr.f32.mxu0 %v2917_v17  ;;  %v639_v58 = vsel %vm4120_vm7, %v635_v54, 0.0  ;;  %vm4123_vm7 = vcmp.eq.s32.totalorder %v3079_v29, 1 }
  0xbb   :  { %2182 = vmatprep.subr.msk.mxu0 %vm122_vm0, %v3032_v24  ;;  %v752_v24 = vrot.slane %v747_v5, %v2992_v9 }
  0xbc   :  { %v3135_v51 = vpop.permute.xlu1 %738  ;;  %v737_v52 = vpop.permute.xlu0 %736 }
  0xbd   :  { %2173 = vmatmul.mubr.msk.f32.gmra.mrb[2].mxu0 %vm115_vm2, %v2169_v50  ;;  %v742_v11 = vsel %vm4125_vm6, %v3135_v51, %v737_v52  ;;  %vm3242_vm1 = vcmp.eq.s32.totalorder %v752_v24, 1  ;;  %v741_v37 = vsel %vm4125_vm6, %v737_v52, %v3135_v51  ;;  %vm4131_vm6 = vcmp.lt.s32.totalorder %v3000_v12, 111 }
  0xbe   :  { %516 = vmatprep.mubr.f32.mxu0 %v2917_v17  ;;  %v760_v25 = vsel %vm3196_vm3, %v742_v11, 0.0  ;;  %v759_v41 = vsel %vm3242_vm1, %v741_v37, 0.0  ;;  %v980_v52 = vrot.slane %v975_v48, %v2992_v9 }
  0xc0   :  { %v3150_v55 = vpop.permute.xlu1 %859  ;;  %v3152_v56 = vpop.permute.xlu0 %857  ;;  %vm3311_vm9 = vcmp.eq.s32.totalorder %v980_v52, 1 }
  0xc1   :  { %2178 = vmatmul.mubr.msk.f32.vlgmr.msra.gmra.mrb[0].mxu0 %vm115_vm2, %v2174_v53  ;;  %v2198_v53 = vld [vmem:[%s4112_s3 + $0x70] sm:$0xff] }
  0xc2   :  { %2183 = vmatpush1.msk.msra.mxu0 %vm122_vm0, %v3017_v21  ;;  %522 = vmatprep.mubr.f32.mxu0 %v2917_v17  ;;  %v638_v21 = vsel %vm4123_vm7, %v634_v4, 0.0  ;;  %vm4132_vm7 = vcmp.lt.s32.totalorder %v3000_v12, 112 }
  0xc3   :  { %2188 = vmatprep.subr.msk.mxu0 %vm122_vm0, %v639_v58  ;;  %v863_v40 = vsel %vm4132_vm7, %v3150_v55, %v3152_v56  ;;  %v862_v51 = vsel %vm4132_vm7, %v3152_v56, %v3150_v55  ;;  %v2199_v55 = vld [vmem:[%s4112_s3 + $0x78] sm:$0xff]  ;;  %v2204_v56 = vld [vmem:[%s4112_s3 + $0x80] sm:$0xff] }
  0xc4   :  { %v102_v61 = vpop.permute.xlu1 %101  ;;  %v100_v62 = vpop.permute.xlu0 %99  ;;  %v869_v42 = vsel %vm4126_vm4, %v863_v40, 0.0  ;;  %vm3292_vm4 = vcmp.eq.s32.totalorder %v984_v28, 1 }
  0xc5   :  { %v105_v63 = vsel %vm4129_vm10, %v102_v61, %v100_v62  ;;  %2179 = vmatmul.mubr.msk.f32.gmra.mrb[2].mxu0 %vm115_vm2, %v2175_v59  ;;  %v104_v0 = vsel %vm4129_vm10, %v100_v62, %v102_v61 }
  0xc6   :  { %2160 = vmatprep.subr.msk.mxu1 %vm122_vm0, %v104_v0  ;;  %v110_v7 = vsel %vm67_vm8, %v105_v63, 0.0  ;;  %612 = vmatprep.mubr.f32.mxu0 %v2917_v17 }
  0xc7   :  { %2161 = vmatpush1.msk.msra.mxu1 %vm122_vm0, %v110_v7 }
  0xc8   :  { %v63_v19 = vpop.permute.xlu1 %62  ;;  %v61_v20 = vpop.permute.xlu0 %60  ;;  %2162 = vmatmul.mubr.msk.f32.vlgmr.msra.gmra.mrb[0].mxu1 %vm115_vm2, %v2158_v1 }
  0xc9   :  { %v65_v22 = vsel %vm4127_vm15, %v61_v20, %v63_v19  ;;  %v66_v23 = vsel %vm4127_vm15, %v63_v19, %v61_v20  ;;  %2184 = vmatmul.mubr.msk.f32.vlgmr.msra.gmra.mrb[0].mxu0 %vm115_vm2, %v2180_v10  ;;  %199 = vmatprep.mubr.f32.mxu1 %v2917_v17  ;;  %v2882_v19 = vld [vmem:[%s4113_s4 + $0x4] ss:$8 sps:$4 sm:$0xff]  }
  0xca   :  { %v95_v26 = vsel %vm3208_vm12, %v66_v23, 0.0  ;;  %v96_v30 = vsel %vm3204_vm5, %v65_v22, 0.0  ;;  %2189 = vmatpush1.msk.msra.mxu0 %vm122_vm0, %v638_v21  ;;  %618 = vmatprep.mubr.f32.mxu0 %v2917_v17 }
  0xcb   :  { %2194 = vmatprep.subr.msk.mxu0 %vm122_vm0, %v760_v25  ;;  %2164 = vmatprep.subr.msk.mxu1 %vm122_vm0, %v96_v30 }
  0xcc   :  { %2165 = vmatpush1.msk.msra.mxu1 %vm122_vm0, %v95_v26  ;;  %v969_v45 = vpop.permute.xlu1 %968  ;;  %v967_v46 = vpop.permute.xlu0 %966 }
  0xcd   :  { %2185 = vmatmul.mubr.msk.f32.gmra.mrb[2].mxu0 %vm115_vm2, %v2181_v31  ;;  %2163 = vmatmul.mubr.msk.f32.gmra.mrb[2].mxu1 %vm115_vm2, %v2159_v32  ;;  %v972_v49 = vsel %vm4131_vm6, %v969_v45, %v967_v46  ;;  %v971_v9 = vsel %vm4131_vm6, %v967_v46, %v969_v45 }
  0xce   :  { %719 = vmatprep.mubr.f32.mxu0 %v2917_v17  ;;  %282 = vmatprep.mubr.f32.mxu1 %v2917_v17  ;;  %v988_v6 = vsel %vm3292_vm4, %v972_v49, 0.0  ;;  %v987_v54 = vsel %vm3311_vm9, %v971_v9, 0.0 }
  0xd1   :  { %2190 = vmatmul.mubr.msk.f32.vlgmr.msra.gmra.mrb[0].mxu0 %vm115_vm2, %v2186_v38  ;;  %2166 = vmatmul.mubr.msk.f32.vlgmr.msra.gmra.mrb[0].mxu1 %vm115_vm2, %v97_v39 }
  0xd2   :  { %2195 = vmatpush1.msk.msra.mxu0 %vm122_vm0, %v759_v41  ;;  %725 = vmatprep.mubr.f32.mxu0 %v2917_v17 }
  0xd3   :  { %2200 = vmatprep.subr.msk.mxu0 %vm122_vm0, %v869_v42  ;;  %288 = vmatprep.mubr.f32.mxu1 %v2917_v17 }
  0xd5   :  { %2191 = vmatmul.mubr.msk.f32.gmra.mrb[2].mxu0 %vm115_vm2, %v2187_v43  ;;  %2167 = vmatmul.mubr.msk.f32.gmra.mrb[2].mxu1 %vm115_vm2, %v98_v44 }
  0xd6   :  { %840 = vmatprep.mubr.f32.mxu0 %v2917_v17 }
  0xd9   :  { %2196 = vmatmul.mubr.msk.f32.vlgmr.msra.gmra.mrb[0].mxu0 %vm115_vm2, %v2192_v47 }
  0xda   :  { %2201 = vmatpush1.msk.msra.mxu0 %vm122_vm0, %v862_v51  ;;  %846 = vmatprep.mubr.f32.mxu0 %v2917_v17 }
  0xdb   :  { %2206 = vmatprep.subr.msk.mxu0 %vm122_vm0, %v988_v6 }
  0xdd   :  { %2197 = vmatmul.mubr.msk.f32.gmra.mrb[2].mxu0 %vm115_vm2, %v2193_v27 }
  0xde   :  { %949 = vmatprep.mubr.f32.mxu0 %v2917_v17 }
  0xe1   :  { %2202 = vmatmul.mubr.msk.f32.vlgmr.msra.gmra.mrb[0].mxu0 %vm115_vm2, %v2198_v53 }
  0xe2   :  { %2207 = vmatpush1.msk.msra.mxu0 %vm122_vm0, %v987_v54  ;;  %955 = vmatprep.mubr.f32.mxu0 %v2917_v17  ;;  %vm4130_vm0 = vcmask 130048  }
  0xe3   :  { %2254 = vmatprep.mubr.msk.bf16.mxu1 %vm4130_vm0, %v2882_v19 }
  0xe5   :  { %2203 = vmatmul.mubr.msk.f32.gmra.mrb[2].mxu0 %vm115_vm2, %v2199_v55 }
  0xe6   :  { %1068 = vmatprep.mubr.f32.mxu0 %v2917_v17 }
  0xe9   :  { %2208 = vmatmul.mubr.msk.f32.vlgmr.msra.gmra.mrb[0].mxu0 %vm115_vm2, %v2204_v56 }
  0xea   :  { %1074 = vmatprep.mubr.f32.mxu0 %v2917_v17 }
  0xed   :  { %2209 = vmatmul.mubr.msk.f32.gmra.mrb[2].mxu0 %vm115_vm2, %v2205_v57  ;;  %vm3375_vm2 = vmpackc.low %vm3204_vm5, %vm3204_vm5 }
  0xee   :  { %vm3390_vm5 = vmpackc.low %vm3208_vm12, %vm3208_vm12 }
  0xef   :  { %vm3409_vm12 = vmpackc.low %vm67_vm8, %vm67_vm8 }
  0xf0   :  { %vm3433_vm8 = vmpackc.low %vm3098_vm14, %vm3098_vm14  ;;  %vm4171_vm14 = vcmp.lt.s32.totalorder %v3000_v12, 1 }
 0x1a4   :  { %v284_v58 = vpop.f32.mrb[0].mxu1 }
 0x1a5   :  { %v286_v59 = vpop.f32.mrb[1].mxu1 }
 0x1a8   :  { %v290_v60 = vpop.f32.mrb[2].mxu1 }
 0x1a9   :  { %v292_v61 = vpop.f32.mrb[3].mxu1 }
 0x1bc   :  { %v1070_v62 = vpop.f32.mrb[0].mxu0 }
 0x1bd   :  { %v3340_v63 = vadd.f32 %v1070_v62, %v284_v58  ;;  %v1072_v0 = vpop.f32.mrb[1].mxu0 }
 0x1be   :  { %v3342_v1 = vadd.f32 %v1072_v0, %v286_v59 }
 0x1c0   :  { %v1076_v4 = vpop.f32.mrb[2].mxu0 }
 0x1c1   :  { %v3344_v5 = vadd.f32 %v1076_v4, %v290_v60  ;;  %v1078_v17 = vpop.f32.mrb[3].mxu0 }
 0x1c2   :  { %v3346_v7 = vadd.f32 %v1078_v17, %v292_v61 }
 0x1c3   :  { %v2480_v10 = vpack.i.bf16 %v3344_v5, %v3340_v63 }
 0x1c4   :  { %v2500_v11 = vpack.i.bf16 %v3346_v7, %v3342_v1 }
 0x1c5   :  { %2481 = vrot.lane.b32.xlu0 %v2480_v10, %s2924_s19 }
 0x1c6   :  { %2501 = vrot.lane.b32.xlu1 %v2500_v11, %s2924_s19 }
 0x1c9   :  { %2486 = vrot.lane.b32.xlu0 %v2480_v10, %s2923_s18 }
 0x1ca   :  { %2506 = vrot.lane.b32.xlu1 %v2500_v11, %s2923_s18 }
 0x1cd   :  { %2491 = vrot.lane.b32.xlu0 %v2480_v10, %s2919_s14 }
 0x1ce   :  { %2511 = vrot.lane.b32.xlu1 %v2500_v11, %s2919_s14 }
 0x1d1   :  { %2496 = vrot.lane.b32.xlu0 %v2480_v10, %s2918_s1 }
 0x1d2   :  { %2516 = vrot.lane.b32.xlu1 %v2500_v11, %s2918_s1 }
 0x1d5   :  { %2521 = vrot.lane.b32.xlu0 %v2480_v10, %s2920_s15 }
 0x1d6   :  { %2541 = vrot.lane.b32.xlu1 %v2500_v11, %s2920_s15 }
 0x1d9   :  { %2526 = vrot.lane.b32.xlu0 %v2480_v10, %s2921_s16 }
 0x1da   :  { %2546 = vrot.lane.b32.xlu1 %v2500_v11, %s2921_s16 }
 0x1dd   :  { %2531 = vrot.lane.b32.xlu0 %v2480_v10, %s2922_s17 }
 0x1de   :  { %2551 = vrot.lane.b32.xlu1 %v2500_v11, %s2922_s17 }
 0x1e1   :  { %2536 = vrot.lane.b32.xlu0 %v2480_v10, %s2925_s20 }
 0x1e2   :  { %2556 = vrot.lane.b32.xlu1 %v2500_v11, %s2925_s20 }
 0x237   :  { %v2482_v20 = vpop.permute.xlu0 %2481 }
 0x238   :  { %v2484_v21 = vunpack.i.h.bf16 %v2482_v20  ;;  %v2483_v22 = vunpack.i.l.bf16 %v2482_v20  ;;  %v2502_v23 = vpop.permute.xlu1 %2501 }
 0x239   :  { %v2504_v24 = vunpack.i.h.bf16 %v2502_v23  ;;  %v2503_v25 = vunpack.i.l.bf16 %v2502_v23 }
 0x23b   :  { %v1094_v30 = vsel %vm4127_vm15, %v2484_v21, %v2504_v24  ;;  %v1096_v31 = vsel %vm4127_vm15, %v2504_v24, %v2484_v21  ;;  %v1093_v32 = vsel %vm4127_vm15, %v2483_v22, %v2503_v25  ;;  %v1095_v37 = vsel %vm4127_vm15, %v2503_v25, %v2483_v22  ;;  %v2487_v38 = vpop.permute.xlu0 %2486  ;;  %vm3416_vm15 = vmpackc.low %vm3094_vm13, %vm3094_vm13 }
 0x23c   :  { %v2213_v39 = vpack.c.bf16 %v1094_v30, %v1093_v32  ;;  %v2216_v40 = vpack.c.bf16 %v1096_v31, %v1095_v37  ;;  %v2489_v41 = vunpack.i.h.bf16 %v2487_v38  ;;  %v2488_v42 = vunpack.i.l.bf16 %v2487_v38  ;;  %v2507_v43 = vpop.permute.xlu1 %2506 }
 0x23d   :  { %v2509_v44 = vunpack.i.h.bf16 %v2507_v43  ;;  %v2508_v45 = vunpack.i.l.bf16 %v2507_v43  ;;  %vm4168_vm13 = vcmp.eq.s32.totalorder %v3009_v16, 1  ;;  %v4176_v16 = vmov 0 }
 0x23e   :  { %2214 = vmatprep.subr.msk.bf16.mxu1 %vm3375_vm2, %v2213_v39 }
 0x23f   :  { %v1114_v46 = vsel %vm4129_vm10, %v2509_v44, %v2489_v41  ;;  %v1113_v18 = vsel %vm4129_vm10, %v2508_v45, %v2488_v42  ;;  %v2492_v47 = vpop.permute.xlu0 %2491  ;;  %2217 = vmatpush1.bf16.msk.msra.mxu1 %vm3390_vm5, %v2216_v40  ;;  %v1111_v48 = vsel %vm4129_vm10, %v2488_v42, %v2508_v45  ;;  %v1112_v49 = vsel %vm4129_vm10, %v2489_v41, %v2509_v44  ;;  %vm4172_vm10 = vmmov %vm4171_vm14 }
 0x240   :  { %v2219_v51 = vpack.c.bf16 %v1114_v46, %v1113_v18  ;;  %v2494_v52 = vunpack.i.h.bf16 %v2492_v47  ;;  %v2493_v6 = vunpack.i.l.bf16 %v2492_v47  ;;  %v2512_v27 = vpop.permute.xlu1 %2511  ;;  %v1120_v9 = vpack.c.bf16 %v1112_v49, %v1111_v48  ;;  %vm4173_vm0 = vmmov %vm4172_vm10 }
 0x241   :  { %v2514_v54 = vunpack.i.h.bf16 %v2512_v27  ;;  %v2513_v55 = vunpack.i.l.bf16 %v2512_v27  ;;  %vm4174_vm6 = vmmov %vm4173_vm0  ;;  %v1158_v40 = vpack.c.bf16 %v3346_v7, %v3342_v1  ;;  %v4181_v46 = vmov 0 }
 0x242   :  { %1248 = vmatprep.subr.bf16.mxu1 %v1120_v9  ;;  %v1157_v48 = vpack.c.bf16 %v3344_v5, %v3340_v63 }
 0x243   :  { %v1130_v57 = vsel %vm4128_vm11, %v2494_v52, %v2514_v54  ;;  %v1132_v58 = vsel %vm4128_vm11, %v2514_v54, %v2494_v52  ;;  %v1129_v59 = vsel %vm4128_vm11, %v2493_v6, %v2513_v55  ;;  %v1131_v60 = vsel %vm4128_vm11, %v2513_v55, %v2493_v6  ;;  %v2497_v61 = vpop.permute.xlu0 %2496  ;;  %2220 = vmatpush1.bf16.msk.msra.mxu1 %vm3409_vm12, %v2219_v51  ;;  %vm3442_vm11 = vmpackc.low %vm4168_vm13, %vm4168_vm13 }
 0x244   :  { %v2222_v62 = vpack.c.bf16 %v1130_v57, %v1129_v59  ;;  %v2225_v0 = vpack.c.bf16 %v1132_v58, %v1131_v60  ;;  %v2499_v4 = vunpack.i.h.bf16 %v2497_v61  ;;  %v2498_v17 = vunpack.i.l.bf16 %v2497_v61  ;;  %v2517_v10 = vpop.permute.xlu1 %2516 }
 0x245   :  { %v2519_v11 = vunpack.i.h.bf16 %v2517_v10  ;;  %v2518_v19 = vunpack.i.l.bf16 %v2517_v10  ;;  %v4170_v36 = vsel %vm3442_vm11, 4294967295, %v4169_v36  ;;  %vm4175_vm13 = vcmp.eq.s32.totalorder %v3090_v34, 1 }
 0x246   :  { %2223 = vmatprep.subr.msk.bf16.mxu1 %vm3416_vm15, %v2222_v62  ;;  %vm3459_vm7 = vmpackc.low %vm4175_vm13, %vm4175_vm13  ;;  %v4190_v58 = vmov 0 }
 0x247   :  { %v1148_v20 = vsel %vm4171_vm14, %v2499_v4, %v2519_v11  ;;  %v1150_v21 = vsel %vm4172_vm10, %v2519_v11, %v2499_v4  ;;  %v1147_v22 = vsel %vm4173_vm0, %v2498_v17, %v2518_v19  ;;  %v1149_v23 = vsel %vm4174_vm6, %v2518_v19, %v2498_v17  ;;  %v2522_v24 = vpop.permute.xlu0 %2521  ;;  %2226 = vmatpush1.bf16.msk.msra.mxu1 %vm3433_vm8, %v2225_v0 }
 0x248   :  { %v4177_v16 = vsel %vm3459_vm7, 4294967295, %v4176_v16  ;;  %v2228_v25 = vpack.c.bf16 %v1148_v20, %v1147_v22  ;;  %v2231_v30 = vpack.c.bf16 %v1150_v21, %v1149_v23  ;;  %v2524_v31 = vunpack.i.h.bf16 %v2522_v24  ;;  %v2542_v37 = vpop.permute.xlu1 %2541 }
 0x249   :  { %v2523_v32 = vunpack.i.l.bf16 %v2522_v24  ;;  %v2544_v38 = vunpack.i.h.bf16 %v2542_v37  ;;  %v2543_v39 = vunpack.i.l.bf16 %v2542_v37  ;;  %vm4178_vm10 = vcmp.lt.s32.totalorder %v3000_v12, 127 }
 0x24a   :  { %2229 = vmatprep.subr.msk.bf16.mxu1 %vm3442_vm11, %v2228_v25  ;;  %vm4179_vm6 = vmmov %vm4178_vm10  ;;  %vm4180_vm0 = vcmp.eq.s32.totalorder %v2989_v8, 1 }
 0x24b   :  { %v1170_v34 = vsel %vm4178_vm10, %v2544_v38, %v2524_v31  ;;  %v1169_v41 = vsel %vm4179_vm6, %v2543_v39, %v2523_v32  ;;  %v2527_v42 = vpop.permute.xlu0 %2526  ;;  %2232 = vmatpush1.bf16.msk.msra.mxu1 %vm3459_vm7, %v2231_v30  ;;  %vm3476_vm14 = vmpackc.low %vm4180_vm0, %vm4180_vm0  ;;  %vm4187_vm7 = vcmp.eq.s32.totalorder %v3079_v29, 1 }
 0x24c   :  { %v2529_v43 = vunpack.i.h.bf16 %v2527_v42  ;;  %v2528_v44 = vunpack.i.l.bf16 %v2527_v42  ;;  %v2547_v45 = vpop.permute.xlu1 %2546  ;;  %1254 = vmatprep.subr.bf16.mxu1 %v1158_v40  ;;  %v4182_v46 = vsel %vm3476_vm14, 4294967295, %v4181_v46  ;;  %vm4183_vm13 = vmmov %vm4179_vm6  ;;  %v2234_v52 = vpack.c.bf16 %v1170_v34, %v1169_v41  ;;  %v2880_v41 = vld [vmem:[%s4113_s4] ss:$8 sps:$4 sm:$0xff]  }
 0x24d   :  { %v2549_v18 = vunpack.i.h.bf16 %v2547_v45  ;;  %v2548_v47 = vunpack.i.l.bf16 %v2547_v45  ;;  %v1168_v49 = vsel %vm4183_vm13, %v2524_v31, %v2544_v38  ;;  %vm4184_vm10 = vmmov %vm4179_vm6  ;;  %vm4185_vm6 = vcmp.lt.s32.totalorder %v3000_v12, 113 }
 0x24e   :  { %v1167_v51 = vsel %vm4184_vm10, %v2523_v32, %v2543_v39  ;;  %vm4186_vm0 = vmmov %vm4185_vm6 }
 0x24f   :  { %v1188_v8 = vsel %vm4185_vm6, %v2549_v18, %v2529_v43  ;;  %v1187_v6 = vsel %vm4186_vm0, %v2548_v47, %v2528_v44  ;;  %v2532_v27 = vpop.permute.xlu0 %2531  ;;  %1255 = vmatpush1.bf16.msra.mxu1 %v1157_v48  ;;  %vm3493_vm11 = vmpackc.low %vm4187_vm7, %vm4187_vm7  ;;  %v2237_v59 = vpack.c.bf16 %v1168_v49, %v1167_v51  ;;  %vm4194_vm6 = vcmp.lt.s32.totalorder %v3000_v12, 112 }
 0x250   :  { %v2534_v54 = vunpack.i.h.bf16 %v2532_v27  ;;  %v2533_v55 = vunpack.i.l.bf16 %v2532_v27  ;;  %v2552_v57 = vpop.permute.xlu1 %2551  ;;  %2235 = vmatprep.subr.msk.bf16.mxu1 %vm3476_vm14, %v2234_v52  ;;  %vm3502_vm13 = vmpackc.low %vm3196_vm3, %vm3196_vm3  ;;  %v2240_v0 = vpack.c.bf16 %v1188_v8, %v1187_v6  ;;  %v2883_v6 = vld [vmem:[%s4114_s5 + $0x4] ss:$8 sps:$4 sm:$0xff]  }
 0x251   :  { %v4191_v58 = vsel %vm3502_vm13, 4294967295, %v4190_v58  ;;  %v2554_v29 = vunpack.i.h.bf16 %v2552_v57  ;;  %v2553_v60 = vunpack.i.l.bf16 %v2552_v57  ;;  %vm4192_vm7 = vmmov %vm4186_vm0 }
 0x252   :  { %v1186_v61 = vsel %vm4192_vm7, %v2529_v43, %v2549_v18  ;;  %vm4193_vm10 = vmmov %vm4186_vm0  ;;  %vm4198_vm7 = vcmp.lt.s32.totalorder %v3007_v15, 240 }
 0x253   :  { %v1185_v62 = vsel %vm4193_vm10, %v2528_v44, %v2548_v47  ;;  %v1206_v4 = vsel %vm4194_vm6, %v2554_v29, %v2534_v54  ;;  %vm4195_vm0 = vmmov %vm4194_vm6  ;;  %v2537_v17 = vpop.permute.xlu0 %2536  ;;  %2238 = vmatpush1.bf16.msk.msra.mxu1 %vm3493_vm11, %v2237_v59 }
 0x254   :  { %v1205_v13 = vsel %vm4195_vm0, %v2553_v60, %v2533_v55  ;;  %vm3519_vm3 = vmpackc.low %vm3242_vm1, %vm3242_vm1  ;;  %v2539_v11 = vunpack.i.h.bf16 %v2537_v17  ;;  %v2538_v19 = vunpack.i.l.bf16 %v2537_v17  ;;  %v2557_v20 = vpop.permute.xlu1 %2556  ;;  %2241 = vmatprep.subr.msk.bf16.mxu1 %vm3502_vm13, %v2240_v0  ;;  %v2243_v21 = vpack.c.bf16 %v1186_v61, %v1185_v62 }
 0x255   :  { %v2559_v22 = vunpack.i.h.bf16 %v2557_v20  ;;  %v2558_v23 = vunpack.i.l.bf16 %v2557_v20  ;;  %vm3528_vm10 = vmpackc.low %vm4198_vm7, %vm4198_vm7  ;;  %v2246_v30 = vpack.c.bf16 %v1206_v4, %v1205_v13 }
 0x256   :  { %vm4201_vm1 = vmmov %vm4195_vm0 }
 0x257   :  { %v1204_v33 = vsel %vm4201_vm1, %v2534_v54, %v2554_v29  ;;  %vm4202_vm6 = vmmov %vm4195_vm0  ;;  %vm4203_vm0 = vcmp.lt.s32.totalorder %v3000_v12, 111  ;;  %2244 = vmatpush1.bf16.msk.msra.mxu1 %vm3519_vm3, %v2243_v21 }
 0x258   :  { %v1203_v25 = vsel %vm4202_vm6, %v2533_v55, %v2553_v60  ;;  %v1224_v31 = vsel %vm4203_vm0, %v2559_v22, %v2539_v11  ;;  %vm4204_vm13 = vmmov %vm4203_vm0  ;;  %2247 = vmatprep.subr.msk.bf16.mxu1 %vm3528_vm10, %v2246_v30 }
 0x259   :  { %v1223_v32 = vsel %vm4204_vm13, %v2558_v23, %v2538_v19  ;;  %vm3547_vm7 = vmpackc.low %vm3292_vm4, %vm3292_vm4  ;;  %v1211_v37 = vpack.c.bf16 %v1204_v33, %v1203_v25  ;;  %vm4211_vm4 = vcmask 130048  }
 0x25a   :  { %vm4207_vm1 = vmmov %vm4203_vm0  ;;  %v2249_v40 = vpack.c.bf16 %v1224_v31, %v1223_v32 }
 0x25b   :  { %v1222_v38 = vsel %vm4207_vm1, %v2539_v11, %v2559_v22  ;;  %vm4208_vm6 = vmmov %vm4203_vm0  ;;  %1261 = vmatpush1.bf16.msra.mxu1 %v1211_v37 }
 0x25c   :  { %v1221_v39 = vsel %vm4208_vm6, %v2538_v19, %v2558_v23  ;;  %vm3558_vm13 = vmpackc.low %vm3311_vm9, %vm3311_vm9  ;;  %2250 = vmatprep.subr.msk.bf16.mxu1 %vm3547_vm7, %v2249_v40  ;;  %vm4212_vm9 = vcmp.lt.s32.totalorder %v3000_v12, 17 }
 0x25d   :  { %v2252_v50 = vpack.c.bf16 %v1222_v38, %v1221_v39  ;;  %vm4213_vm0 = vmmov %vm4212_vm9 }
 0x25e   :  { %vm4214_vm1 = vmmov %vm4213_vm0 }
 0x25f   :  { %2253 = vmatpush1.bf16.msk.msra.mxu1 %vm3558_vm13, %v2252_v50  ;;  %vm4215_vm6 = vmmov %vm4213_vm0 }
 0x262   :  { %1279 = vmatmul.mubr.bf16.vlgmr.msra.gmra.mrb[4].mxu1 %v2880_v41 }
 0x263   :  { %2299 = vmatprep.mubr.msk.bf16.mxu1 %vm4211_vm4, %v2883_v6  ;;  %vm4216_vm4 = vcmp.lt.s32.totalorder %v3000_v12, 16 }
 0x335   :  { %v1280_v42 = vpop.f32.mrb[4].mxu1 }
 0x336   :  { %v1282_v43 = vpop.f32.mrb[5].mxu1  ;;  %v1289_v44 = vmax.f32 %v1280_v42, 0.0 }
 0x337   :  { %v1284_v28 = vpop.f32.mrb[6].mxu1  ;;  %v1290_v47 = vmax.f32 %v1282_v43, 0.0 }
 0x338   :  { %v1291_v45 = vmax.f32 %v1284_v28, 0.0  ;;  %v1286_v18 = vpop.f32.mrb[7].mxu1 }
 0x339   :  { %v1292_v48 = vmax.f32 %v1286_v18, 0.0 }
 0x33a   :  { %v2560_v49 = vpack.i.bf16 %v1291_v45, %v1289_v44  ;;  %v3573_v8 = vpack.c.bf16 %v1291_v45, %v1289_v44 }
 0x33b   :  { %v2580_v51 = vpack.i.bf16 %v1292_v48, %v1290_v47  ;;  %v3571_v52 = vpack.c.bf16 %v1292_v48, %v1290_v47 }
 0x33c   :  { %2561 = vrot.lane.b32.xlu0 %v2560_v49, %s2924_s19 }
 0x33d   :  { %2581 = vrot.lane.b32.xlu1 %v2580_v51, %s2924_s19 }
 0x340   :  { %2566 = vrot.lane.b32.xlu0 %v2560_v49, %s2923_s18 }
 0x341   :  { %2586 = vrot.lane.b32.xlu1 %v2580_v51, %s2923_s18 }
 0x344   :  { %2571 = vrot.lane.b32.xlu0 %v2560_v49, %s2919_s14 }
 0x345   :  { %2591 = vrot.lane.b32.xlu1 %v2580_v51, %s2919_s14 }
 0x348   :  { %2576 = vrot.lane.b32.xlu0 %v2560_v49, %s2918_s1 }
 0x349   :  { %2596 = vrot.lane.b32.xlu1 %v2580_v51, %s2918_s1 }
 0x34c   :  { %2601 = vrot.lane.b32.xlu0 %v2560_v49, %s2920_s15 }
 0x34d   :  { %2621 = vrot.lane.b32.xlu1 %v2580_v51, %s2920_s15 }
 0x350   :  { %2606 = vrot.lane.b32.xlu0 %v2560_v49, %s2921_s16 }
 0x351   :  { %2626 = vrot.lane.b32.xlu1 %v2580_v51, %s2921_s16 }
 0x354   :  { %2611 = vrot.lane.b32.xlu0 %v2560_v49, %s2922_s17 }
 0x355   :  { %2631 = vrot.lane.b32.xlu1 %v2580_v51, %s2922_s17 }
 0x358   :  { %2616 = vrot.lane.b32.xlu0 %v2560_v49, %s2925_s20 }
 0x359   :  { %2636 = vrot.lane.b32.xlu1 %v2580_v51, %s2925_s20 }
 0x3ae   :  { %v2562_v27 = vpop.permute.xlu0 %2561 }
 0x3af   :  { %v2564_v54 = vunpack.i.h.bf16 %v2562_v27  ;;  %v2563_v55 = vunpack.i.l.bf16 %v2562_v27  ;;  %v2582_v57 = vpop.permute.xlu1 %2581 }
 0x3b0   :  { %v2584_v59 = vunpack.i.h.bf16 %v2582_v57  ;;  %v2583_v29 = vunpack.i.l.bf16 %v2582_v57 }
 0x3b2   :  { %v1302_v60 = vsel %vm4212_vm9, %v2564_v54, %v2584_v59  ;;  %v1304_v61 = vsel %vm4213_vm0, %v2584_v59, %v2564_v54  ;;  %v1301_v62 = vsel %vm4214_vm1, %v2563_v55, %v2583_v29  ;;  %v1303_v0 = vsel %vm4215_vm6, %v2583_v29, %v2563_v55  ;;  %v2567_v4 = vpop.permute.xlu0 %2566  ;;  %vm4217_vm9 = vmmov %vm4216_vm4 }
 0x3b3   :  { %v2258_v13 = vpack.c.bf16 %v1302_v60, %v1301_v62  ;;  %v2261_v17 = vpack.c.bf16 %v1304_v61, %v1303_v0  ;;  %v2569_v11 = vunpack.i.h.bf16 %v2567_v4  ;;  %v2568_v19 = vunpack.i.l.bf16 %v2567_v4  ;;  %v2587_v20 = vpop.permute.xlu1 %2586  ;;  %vm4218_vm0 = vmmov %vm4216_vm4 }
 0x3b4   :  { %v2589_v21 = vunpack.i.h.bf16 %v2587_v20  ;;  %v2588_v22 = vunpack.i.l.bf16 %v2587_v20  ;;  %vm4219_vm1 = vmmov %vm4218_vm0  ;;  %vm4220_vm6 = vcmp.lt.s32.totalorder %v3000_v12, 15 }
 0x3b5   :  { %2259 = vmatprep.subr.msk.bf16.mxu1 %vm3375_vm2, %v2258_v13 }
 0x3b6   :  { %v1322_v23 = vsel %vm4216_vm4, %v2589_v21, %v2569_v11  ;;  %v1321_v33 = vsel %vm4217_vm9, %v2588_v22, %v2568_v19  ;;  %v2572_v25 = vpop.permute.xlu0 %2571  ;;  %2262 = vmatpush1.bf16.msk.msra.mxu1 %vm3390_vm5, %v2261_v17  ;;  %v1319_v30 = vsel %vm4218_vm0, %v2568_v19, %v2588_v22  ;;  %v1320_v31 = vsel %vm4219_vm1, %v2569_v11, %v2589_v21  ;;  %vm4221_vm4 = vmmov %vm4220_vm6 }
 0x3b7   :  { %v2264_v32 = vpack.c.bf16 %v1322_v23, %v1321_v33  ;;  %v2574_v37 = vunpack.i.h.bf16 %v2572_v25  ;;  %v2573_v38 = vunpack.i.l.bf16 %v2572_v25  ;;  %v2592_v39 = vpop.permute.xlu1 %2591  ;;  %v1328_v40 = vpack.c.bf16 %v1320_v31, %v1319_v30  ;;  %vm4222_vm9 = vmmov %vm4221_vm4 }
 0x3b8   :  { %v2594_v50 = vunpack.i.h.bf16 %v2592_v39  ;;  %v2593_v41 = vunpack.i.l.bf16 %v2592_v39  ;;  %vm4223_vm0 = vmmov %vm4221_vm4  ;;  %vm4224_vm1 = vcmp.lt.s32.totalorder %v3000_v12, 1 }
 0x3b9   :  { %1455 = vmatprep.subr.bf16.mxu1 %v1328_v40 }
 0x3ba   :  { %v1338_v42 = vsel %vm4220_vm6, %v2574_v37, %v2594_v50  ;;  %v1340_v43 = vsel %vm4221_vm4, %v2594_v50, %v2574_v37  ;;  %v1337_v28 = vsel %vm4222_vm9, %v2573_v38, %v2593_v41  ;;  %v1339_v44 = vsel %vm4223_vm0, %v2593_v41, %v2573_v38  ;;  %v2577_v45 = vpop.permute.xlu0 %2576  ;;  %2265 = vmatpush1.bf16.msk.msra.mxu1 %vm3409_vm12, %v2264_v32  ;;  %vm4225_vm6 = vmmov %vm4224_vm1 }
 0x3bb   :  { %v2267_v18 = vpack.c.bf16 %v1338_v42, %v1337_v28  ;;  %v2270_v47 = vpack.c.bf16 %v1340_v43, %v1339_v44  ;;  %v2579_v48 = vunpack.i.h.bf16 %v2577_v45  ;;  %v2578_v49 = vunpack.i.l.bf16 %v2577_v45  ;;  %v2597_v51 = vpop.permute.xlu1 %2596  ;;  %vm4226_vm4 = vmmov %vm4224_vm1 }
 0x3bc   :  { %v2599_v6 = vunpack.i.h.bf16 %v2597_v51  ;;  %v2598_v27 = vunpack.i.l.bf16 %v2597_v51  ;;  %vm4227_vm9 = vmmov %vm4224_vm1  ;;  %vm4228_vm0 = vnez %v4170_v36 }
 0x3bd   :  { %2268 = vmatprep.subr.msk.bf16.mxu1 %vm3416_vm15, %v2267_v18 }
 0x3be   :  { %v1356_v54 = vsel %vm4224_vm1, %v2579_v48, %v2599_v6  ;;  %v1358_v55 = vsel %vm4225_vm6, %v2599_v6, %v2579_v48  ;;  %v1355_v57 = vsel %vm4226_vm4, %v2578_v49, %v2598_v27  ;;  %v1357_v59 = vsel %vm4227_vm9, %v2598_v27, %v2578_v49  ;;  %v2602_v29 = vpop.permute.xlu0 %2601  ;;  %2271 = vmatpush1.bf16.msk.msra.mxu1 %vm3433_vm8, %v2270_v47 }
 0x3bf   :  { %v2273_v60 = vpack.c.bf16 %v1356_v54, %v1355_v57  ;;  %v2276_v61 = vpack.c.bf16 %v1358_v55, %v1357_v59  ;;  %v2604_v62 = vunpack.i.h.bf16 %v2602_v29  ;;  %v2603_v0 = vunpack.i.l.bf16 %v2602_v29  ;;  %v2622_v4 = vpop.permute.xlu1 %2621 }
 0x3c0   :  { %v2624_v13 = vunpack.i.h.bf16 %v2622_v4  ;;  %v2623_v17 = vunpack.i.l.bf16 %v2622_v4  ;;  %vm4229_vm1 = vcmp.lt.s32.totalorder %v3000_v12, 127  ;;  %vm4231_vm4 = vnez %v4177_v16 }
 0x3c1   :  { %2274 = vmatprep.subr.msk.bf16.mxu1 %vm4228_vm0, %v2273_v60  ;;  %vm4230_vm6 = vmmov %vm4229_vm1 }
 0x3c2   :  { %v1378_v11 = vsel %vm4229_vm1, %v2624_v13, %v2604_v62  ;;  %v1377_v19 = vsel %vm4230_vm6, %v2623_v17, %v2603_v0  ;;  %v2607_v20 = vpop.permute.xlu0 %2606  ;;  %2277 = vmatpush1.bf16.msk.msra.mxu1 %vm4231_vm4, %v2276_v61  ;;  %vm4232_vm9 = vmmov %vm4229_vm1 }
 0x3c3   :  { %v2609_v21 = vunpack.i.h.bf16 %v2607_v20  ;;  %v2608_v22 = vunpack.i.l.bf16 %v2607_v20  ;;  %v2627_v23 = vpop.permute.xlu1 %2626  ;;  %1461 = vmatprep.subr.bf16.mxu1 %v3571_v52  ;;  %v1376_v30 = vsel %vm4232_vm9, %v2604_v62, %v2624_v13  ;;  %vm4233_vm0 = vmmov %vm4229_vm1  ;;  %v2279_v32 = vpack.c.bf16 %v1378_v11, %v1377_v19 }
 0x3c4   :  { %v2629_v33 = vunpack.i.h.bf16 %v2627_v23  ;;  %v2628_v25 = vunpack.i.l.bf16 %v2627_v23  ;;  %v1375_v31 = vsel %vm4233_vm0, %v2603_v0, %v2623_v17  ;;  %vm4234_vm1 = vcmp.lt.s32.totalorder %v3000_v12, 113  ;;  %v2885_v17 = vld [vmem:[%s4114_s5] ss:$8 sps:$4 sm:$0xff]  }
 0x3c5   :  { %vm4235_vm6 = vmmov %vm4234_vm1  ;;  %v2282_v41 = vpack.c.bf16 %v1376_v30, %v1375_v31 }
 0x3c6   :  { %v1396_v37 = vsel %vm4234_vm1, %v2629_v33, %v2609_v21  ;;  %v1395_v38 = vsel %vm4235_vm6, %v2628_v25, %v2608_v22  ;;  %v2612_v39 = vpop.permute.xlu0 %2611  ;;  %1462 = vmatpush1.bf16.msra.mxu1 %v3573_v8  ;;  %vm4236_vm0 = vmmov %vm4234_vm1  ;;  %vm4238_vm1 = vcmp.lt.s32.totalorder %v3000_v12, 112 }
 0x3c7   :  { %v2614_v40 = vunpack.i.h.bf16 %v2612_v39  ;;  %v2613_v52 = vunpack.i.l.bf16 %v2612_v39  ;;  %v2632_v50 = vpop.permute.xlu1 %2631  ;;  %2280 = vmatprep.subr.msk.bf16.mxu1 %vm3476_vm14, %v2279_v32  ;;  %v1394_v28 = vsel %vm4236_vm0, %v2609_v21, %v2629_v33  ;;  %vm4237_vm9 = vmmov %vm4236_vm0  ;;  %v2285_v45 = vpack.c.bf16 %v1396_v37, %v1395_v38 }
 0x3c8   :  { %v2634_v42 = vunpack.i.h.bf16 %v2632_v50  ;;  %v2633_v43 = vunpack.i.l.bf16 %v2632_v50  ;;  %v1393_v44 = vsel %vm4237_vm9, %v2608_v22, %v2628_v25  ;;  %vm4239_vm6 = vmmov %vm4238_vm1  ;;  %vm4240_vm14 = vnez %v4191_v58 }
 0x3c9   :  { %v2288_v6 = vpack.c.bf16 %v1394_v28, %v1393_v44  ;;  %vm4241_vm0 = vmmov %vm4238_vm1 }
 0x3ca   :  { %v1414_v18 = vsel %vm4238_vm1, %v2634_v42, %v2614_v40  ;;  %v1413_v8 = vsel %vm4239_vm6, %v2633_v43, %v2613_v52  ;;  %v2617_v47 = vpop.permute.xlu0 %2616  ;;  %2283 = vmatpush1.bf16.msk.msra.mxu1 %vm3493_vm11, %v2282_v41  ;;  %v1412_v55 = vsel %vm4241_vm0, %v2614_v40, %v2634_v42  ;;  %vm4242_vm9 = vmmov %vm4241_vm0  ;;  %vm4243_vm1 = vcmp.lt.s32.totalorder %v3000_v12, 111 }
 0x3cb   :  { %v2619_v48 = vunpack.i.h.bf16 %v2617_v47  ;;  %v2618_v49 = vunpack.i.l.bf16 %v2617_v47  ;;  %v2637_v51 = vpop.permute.xlu1 %2636  ;;  %2286 = vmatprep.subr.msk.bf16.mxu1 %vm4240_vm14, %v2285_v45  ;;  %v1411_v57 = vsel %vm4242_vm9, %v2613_v52, %v2633_v43  ;;  %v2291_v59 = vpack.c.bf16 %v1414_v18, %v1413_v8  ;;  %vm4244_vm6 = vmmov %vm4243_vm1 }
 0x3cc   :  { %v2639_v27 = vunpack.i.h.bf16 %v2637_v51  ;;  %v2638_v54 = vunpack.i.l.bf16 %v2637_v51  ;;  %v1419_v61 = vpack.c.bf16 %v1412_v55, %v1411_v57  ;;  %vm4245_vm14 = vmmov %vm4243_vm1  ;;  %vm4248_vm9 = vcmp.lt.s32.totalorder %v3000_v12, 17 }
 0x3cd   :  { %vm4246_vm0 = vmmov %vm4243_vm1 }
 0x3ce   :  { %v1432_v29 = vsel %vm4243_vm1, %v2639_v27, %v2619_v48  ;;  %v1431_v60 = vsel %vm4244_vm6, %v2638_v54, %v2618_v49  ;;  %2289 = vmatpush1.bf16.msk.msra.mxu1 %vm3519_vm3, %v2288_v6  ;;  %v1430_v62 = vsel %vm4245_vm14, %v2619_v48, %v2639_v27  ;;  %v1429_v0 = vsel %vm4246_vm0, %v2618_v49, %v2638_v54  ;;  %vm4249_vm1 = vmmov %vm4248_vm9 }
 0x3cf   :  { %2292 = vmatprep.subr.msk.bf16.mxu1 %vm3528_vm10, %v2291_v59  ;;  %v2294_v4 = vpack.c.bf16 %v1432_v29, %v1431_v60  ;;  %v2297_v13 = vpack.c.bf16 %v1430_v62, %v1429_v0  ;;  %vm4247_vm14 = vcmask 130048   ;;  %vm4250_vm6 = vmmov %vm4249_vm1 }
 0x3d0   :  { %vm4251_vm0 = vmmov %vm4249_vm1 }
 0x3d2   :  { %1468 = vmatpush1.bf16.msra.mxu1 %v1419_v61 }
 0x3d3   :  { %2295 = vmatprep.subr.msk.bf16.mxu1 %vm3547_vm7, %v2294_v4 }
 0x3d6   :  { %2298 = vmatpush1.bf16.msk.msra.mxu1 %vm3558_vm13, %v2297_v13 }
 0x3d9   :  { %1486 = vmatmul.mubr.bf16.vlgmr.msra.gmra.mrb[8].mxu1 %v2885_v17 }
 0x4ac   :  { %v1487_v11 = vpop.f32.mrb[8].mxu1 }
 0x4ad   :  { %v1489_v19 = vpop.f32.mrb[9].mxu1  ;;  %v3691_v21 = vadd.f32 %v3340_v63, %v1487_v11  ;;  %v2888_v63 = vld [vmem:[%s4115_s6 + $0x4] ss:$8 sps:$4 sm:$0xff]  }
 0x4ae   :  { %v1491_v20 = vpop.f32.mrb[10].mxu1  ;;  %v3697_v33 = vadd.f32 %v3342_v1, %v1489_v19  ;;  %2344 = vmatprep.mubr.msk.bf16.mxu0 %vm4247_vm14, %v2888_v63  ;;  %vm4252_vm14 = vcmp.lt.s32.totalorder %v3000_v12, 16 }
 0x4af   :  { %v3694_v22 = vadd.f32 %v3344_v5, %v1491_v20  ;;  %v1493_v23 = vpop.f32.mrb[11].mxu1 }
 0x4b0   :  { %v3700_v25 = vadd.f32 %v3346_v7, %v1493_v23 }
 0x4b1   :  { %v2640_v30 = vpack.i.bf16 %v3694_v22, %v3691_v21 }
 0x4b2   :  { %v2660_v31 = vpack.i.bf16 %v3700_v25, %v3697_v33 }
 0x4b3   :  { %2641 = vrot.lane.b32.xlu0 %v2640_v30, %s2924_s19 }
 0x4b4   :  { %2661 = vrot.lane.b32.xlu1 %v2660_v31, %s2924_s19 }
 0x4b7   :  { %2646 = vrot.lane.b32.xlu0 %v2640_v30, %s2923_s18 }
 0x4b8   :  { %2666 = vrot.lane.b32.xlu1 %v2660_v31, %s2923_s18 }
 0x4bb   :  { %2651 = vrot.lane.b32.xlu0 %v2640_v30, %s2919_s14 }
 0x4bc   :  { %2671 = vrot.lane.b32.xlu1 %v2660_v31, %s2919_s14 }
 0x4bf   :  { %2656 = vrot.lane.b32.xlu0 %v2640_v30, %s2918_s1 }
 0x4c0   :  { %2676 = vrot.lane.b32.xlu1 %v2660_v31, %s2918_s1 }
 0x4c3   :  { %2681 = vrot.lane.b32.xlu0 %v2640_v30, %s2920_s15 }
 0x4c4   :  { %2701 = vrot.lane.b32.xlu1 %v2660_v31, %s2920_s15 }
 0x4c7   :  { %2686 = vrot.lane.b32.xlu0 %v2640_v30, %s2921_s16 }
 0x4c8   :  { %2706 = vrot.lane.b32.xlu1 %v2660_v31, %s2921_s16 }
 0x4cb   :  { %2691 = vrot.lane.b32.xlu0 %v2640_v30, %s2922_s17 }
 0x4cc   :  { %2711 = vrot.lane.b32.xlu1 %v2660_v31, %s2922_s17 }
 0x4cf   :  { %2696 = vrot.lane.b32.xlu0 %v2640_v30, %s2925_s20 }
 0x4d0   :  { %2716 = vrot.lane.b32.xlu1 %v2660_v31, %s2925_s20 }
 0x525   :  { %v2642_v1 = vpop.permute.xlu0 %2641 }
 0x526   :  { %v2644_v5 = vunpack.i.h.bf16 %v2642_v1  ;;  %v2643_v7 = vunpack.i.l.bf16 %v2642_v1  ;;  %v2662_v32 = vpop.permute.xlu1 %2661 }
 0x527   :  { %v2664_v37 = vunpack.i.h.bf16 %v2662_v32  ;;  %v2663_v38 = vunpack.i.l.bf16 %v2662_v32 }
 0x529   :  { %v1504_v39 = vsel %vm4248_vm9, %v2643_v7, %v2663_v38  ;;  %v1505_v40 = vsel %vm4249_vm1, %v2644_v5, %v2664_v37  ;;  %v1506_v52 = vsel %vm4250_vm6, %v2663_v38, %v2643_v7  ;;  %v1507_v50 = vsel %vm4251_vm0, %v2664_v37, %v2644_v5  ;;  %v2647_v41 = vpop.permute.xlu0 %2646  ;;  %vm4253_vm9 = vmmov %vm4252_vm14 }
 0x52a   :  { %v2303_v42 = vpack.c.bf16 %v1505_v40, %v1504_v39  ;;  %v2306_v43 = vpack.c.bf16 %v1507_v50, %v1506_v52  ;;  %v2649_v28 = vunpack.i.h.bf16 %v2647_v41  ;;  %v2648_v44 = vunpack.i.l.bf16 %v2647_v41  ;;  %v2667_v45 = vpop.permute.xlu1 %2666  ;;  %vm4254_vm1 = vmmov %vm4253_vm9 }
 0x52b   :  { %v2669_v18 = vunpack.i.h.bf16 %v2667_v45  ;;  %v2668_v8 = vunpack.i.l.bf16 %v2667_v45  ;;  %vm4255_vm6 = vmmov %vm4254_vm1  ;;  %vm4256_vm0 = vcmp.lt.s32.totalorder %v3000_v12, 15 }
 0x52c   :  { %2304 = vmatprep.subr.msk.bf16.mxu0 %vm3375_vm2, %v2303_v42  ;;  %v1569_v42 = vpack.c.bf16 %v3700_v25, %v3697_v33 }
 0x52d   :  { %v1524_v47 = vsel %vm4252_vm14, %v2668_v8, %v2648_v44  ;;  %v1525_v48 = vsel %vm4253_vm9, %v2669_v18, %v2649_v28  ;;  %v2652_v49 = vpop.permute.xlu0 %2651  ;;  %2307 = vmatpush1.bf16.msk.msra.mxu0 %vm3390_vm5, %v2306_v43  ;;  %v1522_v51 = vsel %vm4254_vm1, %v2648_v44, %v2668_v8  ;;  %v1523_v6 = vsel %vm4255_vm6, %v2649_v28, %v2669_v18  ;;  %vm4257_vm14 = vmmov %vm4256_vm0 }
 0x52e   :  { %v2309_v27 = vpack.c.bf16 %v1525_v48, %v1524_v47  ;;  %v2654_v54 = vunpack.i.h.bf16 %v2652_v49  ;;  %v2653_v55 = vunpack.i.l.bf16 %v2652_v49  ;;  %v2672_v57 = vpop.permute.xlu1 %2671  ;;  %v1531_v59 = vpack.c.bf16 %v1523_v6, %v1522_v51  ;;  %vm4258_vm9 = vmmov %vm4256_vm0 }
 0x52f   :  { %v2674_v29 = vunpack.i.h.bf16 %v2672_v57  ;;  %v2673_v60 = vunpack.i.l.bf16 %v2672_v57  ;;  %vm4259_vm1 = vmmov %vm4256_vm0  ;;  %vm4260_vm6 = vcmp.lt.s32.totalorder %v3000_v12, 1  ;;  %v1568_v49 = vpack.c.bf16 %v3694_v22, %v3691_v21 }
 0x530   :  { %1658 = vmatprep.subr.bf16.mxu0 %v1531_v59 }
 0x531   :  { %v1540_v61 = vsel %vm4256_vm0, %v2653_v55, %v2673_v60  ;;  %v1541_v62 = vsel %vm4257_vm14, %v2654_v54, %v2674_v29  ;;  %v1542_v0 = vsel %vm4258_vm9, %v2673_v60, %v2653_v55  ;;  %v1543_v4 = vsel %vm4259_vm1, %v2674_v29, %v2654_v54  ;;  %v2657_v13 = vpop.permute.xlu0 %2656  ;;  %2310 = vmatpush1.bf16.msk.msra.mxu0 %vm3409_vm12, %v2309_v27  ;;  %vm4261_vm0 = vmmov %vm4260_vm6 }
 0x532   :  { %v2312_v17 = vpack.c.bf16 %v1541_v62, %v1540_v61  ;;  %v2315_v11 = vpack.c.bf16 %v1543_v4, %v1542_v0  ;;  %v2659_v19 = vunpack.i.h.bf16 %v2657_v13  ;;  %v2658_v20 = vunpack.i.l.bf16 %v2657_v13  ;;  %v2677_v23 = vpop.permute.xlu1 %2676  ;;  %vm4262_vm14 = vmmov %vm4261_vm0 }
 0x533   :  { %v2679_v30 = vunpack.i.h.bf16 %v2677_v23  ;;  %v2678_v31 = vunpack.i.l.bf16 %v2677_v23  ;;  %vm4263_vm9 = vmmov %vm4261_vm0  ;;  %vm4264_vm1 = vnez %v4170_v36 }
 0x534   :  { %2313 = vmatprep.subr.msk.bf16.mxu0 %vm3416_vm15, %v2312_v17 }
 0x535   :  { %v1558_v63 = vsel %vm4260_vm6, %v2658_v20, %v2678_v31  ;;  %v1559_v1 = vsel %vm4261_vm0, %v2659_v19, %v2679_v30  ;;  %v1560_v5 = vsel %vm4262_vm14, %v2678_v31, %v2658_v20  ;;  %v1561_v7 = vsel %vm4263_vm9, %v2679_v30, %v2659_v19  ;;  %v2682_v32 = vpop.permute.xlu0 %2681  ;;  %2316 = vmatpush1.bf16.msk.msra.mxu0 %vm3433_vm8, %v2315_v11 }
 0x536   :  { %v2318_v37 = vpack.c.bf16 %v1559_v1, %v1558_v63  ;;  %v2321_v38 = vpack.c.bf16 %v1561_v7, %v1560_v5  ;;  %v2684_v39 = vunpack.i.h.bf16 %v2682_v32  ;;  %v2683_v40 = vunpack.i.l.bf16 %v2682_v32  ;;  %v2702_v52 = vpop.permute.xlu1 %2701 }
 0x537   :  { %v2704_v50 = vunpack.i.h.bf16 %v2702_v52  ;;  %v2703_v41 = vunpack.i.l.bf16 %v2702_v52  ;;  %vm4265_vm6 = vcmp.lt.s32.totalorder %v3000_v12, 127 }
 0x538   :  { %2319 = vmatprep.subr.msk.bf16.mxu0 %vm4264_vm1, %v2318_v37  ;;  %vm4266_vm0 = vmmov %vm4265_vm6 }
 0x539   :  { %v1580_v43 = vsel %vm4265_vm6, %v2703_v41, %v2683_v40  ;;  %v1581_v28 = vsel %vm4266_vm0, %v2704_v50, %v2684_v39  ;;  %v2687_v44 = vpop.permute.xlu0 %2686  ;;  %2322 = vmatpush1.bf16.msk.msra.mxu0 %vm4231_vm4, %v2321_v38  ;;  %vm4267_vm14 = vmmov %vm4266_vm0  ;;  %vm4269_vm6 = vcmp.lt.s32.totalorder %v3000_v12, 113  ;;  %vm4271_vm4 = vnez %v4182_v46 }
 0x53a   :  { %v2689_v45 = vunpack.i.h.bf16 %v2687_v44  ;;  %v2688_v18 = vunpack.i.l.bf16 %v2687_v44  ;;  %v2707_v8 = vpop.permute.xlu1 %2706  ;;  %1664 = vmatprep.subr.bf16.mxu0 %v1569_v42  ;;  %v1578_v51 = vsel %vm4267_vm14, %v2683_v40, %v2703_v41  ;;  %vm4268_vm9 = vmmov %vm4266_vm0  ;;  %v2324_v27 = vpack.c.bf16 %v1581_v28, %v1580_v43  ;;  %v2886_v43 = vld [vmem:[%s4115_s6] ss:$8 sps:$4 sm:$0xff]  }
 0x53b   :  { %v2709_v47 = vunpack.i.h.bf16 %v2707_v8  ;;  %v2708_v48 = vunpack.i.l.bf16 %v2707_v8  ;;  %v1579_v6 = vsel %vm4268_vm9, %v2684_v39, %v2704_v50  ;;  %vm4270_vm0 = vmmov %vm4269_vm6 }
 0x53c   :  { %v2327_v61 = vpack.c.bf16 %v1579_v6, %v1578_v51  ;;  %vm4272_vm14 = vmmov %vm4270_vm0 }
 0x53d   :  { %v1598_v54 = vsel %vm4269_vm6, %v2708_v48, %v2688_v18  ;;  %v1599_v55 = vsel %vm4270_vm0, %v2709_v47, %v2689_v45  ;;  %v2692_v57 = vpop.permute.xlu0 %2691  ;;  %1665 = vmatpush1.bf16.msra.mxu0 %v1568_v49  ;;  %v1596_v4 = vsel %vm4272_vm14, %v2688_v18, %v2708_v48  ;;  %vm4273_vm9 = vmmov %vm4270_vm0  ;;  %vm4274_vm6 = vcmp.lt.s32.totalorder %v3000_v12, 112 }
 0x53e   :  { %v2694_v59 = vunpack.i.h.bf16 %v2692_v57  ;;  %v2693_v29 = vunpack.i.l.bf16 %v2692_v57  ;;  %v2712_v60 = vpop.permute.xlu1 %2711  ;;  %2325 = vmatprep.subr.msk.bf16.mxu0 %vm4271_vm4, %v2324_v27  ;;  %v1597_v13 = vsel %vm4273_vm9, %v2689_v45, %v2709_v47  ;;  %v2330_v17 = vpack.c.bf16 %v1599_v55, %v1598_v54  ;;  %vm4275_vm0 = vmmov %vm4274_vm6  ;;  %v2889_v55 = vld [vmem:[%s4116_s7 + $0x4] ss:$8 sps:$4 sm:$0xff]  }
 0x53f   :  { %v2714_v62 = vunpack.i.h.bf16 %v2712_v60  ;;  %v2713_v0 = vunpack.i.l.bf16 %v2712_v60  ;;  %vm4276_vm4 = vnez %v4191_v58  ;;  %v2333_v63 = vpack.c.bf16 %v1597_v13, %v1596_v4  ;;  %vm4277_vm14 = vmmov %vm4275_vm0 }
 0x540   :  { %vm4278_vm9 = vmmov %vm4275_vm0 }
 0x541   :  { %v1616_v11 = vsel %vm4274_vm6, %v2713_v0, %v2693_v29  ;;  %v1617_v19 = vsel %vm4275_vm0, %v2714_v62, %v2694_v59  ;;  %v2697_v20 = vpop.permute.xlu0 %2696  ;;  %2328 = vmatpush1.bf16.msk.msra.mxu0 %vm3493_vm11, %v2327_v61  ;;  %v1614_v7 = vsel %vm4277_vm14, %v2693_v29, %v2713_v0  ;;  %v1615_v32 = vsel %vm4278_vm9, %v2694_v59, %v2714_v62 }
 0x542   :  { %v2699_v23 = vunpack.i.h.bf16 %v2697_v20  ;;  %v2698_v30 = vunpack.i.l.bf16 %v2697_v20  ;;  %v2717_v31 = vpop.permute.xlu1 %2716  ;;  %2331 = vmatprep.subr.msk.bf16.mxu0 %vm4276_vm4, %v2330_v17  ;;  %v2336_v37 = vpack.c.bf16 %v1617_v19, %v1616_v11  ;;  %vm4279_vm6 = vcmp.lt.s32.totalorder %v3000_v12, 111 }
 0x543   :  { %v2719_v1 = vunpack.i.h.bf16 %v2717_v31  ;;  %v2718_v5 = vunpack.i.l.bf16 %v2717_v31  ;;  %vm4280_vm0 = vmmov %vm4279_vm6  ;;  %v1622_v40 = vpack.c.bf16 %v1615_v32, %v1614_v7  ;;  %vm4284_vm9 = vcmp.lt.s32.totalorder %v3000_v12, 17 }
 0x544   :  { %vm4281_vm4 = vmmov %vm4280_vm0 }
 0x545   :  { %v1634_v38 = vsel %vm4279_vm6, %v2718_v5, %v2698_v30  ;;  %v1635_v39 = vsel %vm4280_vm0, %v2719_v1, %v2699_v23  ;;  %2334 = vmatpush1.bf16.msk.msra.mxu0 %vm3519_vm3, %v2333_v63  ;;  %v1632_v52 = vsel %vm4281_vm4, %v2698_v30, %v2718_v5  ;;  %vm4282_vm14 = vmmov %vm4280_vm0  ;;  %vm4283_vm4 = vcmask 130048  }
 0x546   :  { %2337 = vmatprep.subr.msk.bf16.mxu0 %vm3528_vm10, %v2336_v37  ;;  %v1633_v50 = vsel %vm4282_vm14, %v2699_v23, %v2719_v1  ;;  %v2339_v41 = vpack.c.bf16 %v1635_v39, %v1634_v38  ;;  %2389 = vmatprep.mubr.msk.bf16.mxu1 %vm4283_vm4, %v2889_v55  ;;  %vm4285_vm6 = vmmov %vm4284_vm9  ;;  %vm4288_vm4 = vcmp.lt.s32.totalorder %v3000_v12, 16 }
 0x547   :  { %v2342_v42 = vpack.c.bf16 %v1633_v50, %v1632_v52  ;;  %vm4286_vm0 = vmmov %vm4285_vm6 }
 0x548   :  { %vm4287_vm14 = vmmov %vm4286_vm0 }
 0x549   :  { %1671 = vmatpush1.bf16.msra.mxu0 %v1622_v40 }
 0x54a   :  { %2340 = vmatprep.subr.msk.bf16.mxu0 %vm3547_vm7, %v2339_v41 }
 0x54d   :  { %2343 = vmatpush1.bf16.msk.msra.mxu0 %vm3558_vm13, %v2342_v42 }
 0x550   :  { %1689 = vmatmul.mubr.bf16.vlgmr.msra.gmra.mrb[4].mxu0 %v2886_v43 }
 0x623   :  { %v1690_v28 = vpop.f32.mrb[4].mxu0 }
 0x624   :  { %v1692_v44 = vpop.f32.mrb[5].mxu0  ;;  %v1699_v18 = vmax.f32 %v1690_v28, 0.0 }
 0x625   :  { %v1694_v45 = vpop.f32.mrb[6].mxu0  ;;  %v1700_v48 = vmax.f32 %v1692_v44, 0.0 }
 0x626   :  { %v1701_v8 = vmax.f32 %v1694_v45, 0.0  ;;  %v1696_v47 = vpop.f32.mrb[7].mxu0 }
 0x627   :  { %v1702_v49 = vmax.f32 %v1696_v47, 0.0 }
 0x628   :  { %v2720_v51 = vpack.i.bf16 %v1701_v8, %v1699_v18  ;;  %v3829_v54 = vpack.c.bf16 %v1701_v8, %v1699_v18 }
 0x629   :  { %v2740_v6 = vpack.i.bf16 %v1702_v49, %v1700_v48  ;;  %v3827_v27 = vpack.c.bf16 %v1702_v49, %v1700_v48 }
 0x62a   :  { %2721 = vrot.lane.b32.xlu0 %v2720_v51, %s2924_s19 }
 0x62b   :  { %2741 = vrot.lane.b32.xlu1 %v2740_v6, %s2924_s19 }
 0x62e   :  { %2726 = vrot.lane.b32.xlu0 %v2720_v51, %s2923_s18 }
 0x62f   :  { %2746 = vrot.lane.b32.xlu1 %v2740_v6, %s2923_s18 }
 0x632   :  { %2731 = vrot.lane.b32.xlu0 %v2720_v51, %s2919_s14 }
 0x633   :  { %2751 = vrot.lane.b32.xlu1 %v2740_v6, %s2919_s14 }
 0x636   :  { %2736 = vrot.lane.b32.xlu0 %v2720_v51, %s2918_s1 }
 0x637   :  { %2756 = vrot.lane.b32.xlu1 %v2740_v6, %s2918_s1 }
 0x63a   :  { %2761 = vrot.lane.b32.xlu0 %v2720_v51, %s2920_s15 }
 0x63b   :  { %2781 = vrot.lane.b32.xlu1 %v2740_v6, %s2920_s15 }
 0x63e   :  { %2766 = vrot.lane.b32.xlu0 %v2720_v51, %s2921_s16 }
 0x63f   :  { %2786 = vrot.lane.b32.xlu1 %v2740_v6, %s2921_s16 }
 0x642   :  { %2771 = vrot.lane.b32.xlu0 %v2720_v51, %s2922_s17 }
 0x643   :  { %2791 = vrot.lane.b32.xlu1 %v2740_v6, %s2922_s17 }
 0x646   :  { %2776 = vrot.lane.b32.xlu0 %v2720_v51, %s2925_s20 }
 0x647   :  { %2796 = vrot.lane.b32.xlu1 %v2740_v6, %s2925_s20 }
 0x69c   :  { %v2722_v57 = vpop.permute.xlu0 %2721 }
 0x69d   :  { %v2724_v59 = vunpack.i.h.bf16 %v2722_v57  ;;  %v2723_v29 = vunpack.i.l.bf16 %v2722_v57  ;;  %v2742_v60 = vpop.permute.xlu1 %2741 }
 0x69e   :  { %v2744_v61 = vunpack.i.h.bf16 %v2742_v60  ;;  %v2743_v62 = vunpack.i.l.bf16 %v2742_v60 }
 0x6a0   :  { %v1712_v0 = vsel %vm4284_vm9, %v2724_v59, %v2744_v61  ;;  %v1714_v4 = vsel %vm4285_vm6, %v2744_v61, %v2724_v59  ;;  %v1711_v13 = vsel %vm4286_vm0, %v2723_v29, %v2743_v62  ;;  %v1713_v17 = vsel %vm4287_vm14, %v2743_v62, %v2723_v29  ;;  %v2727_v11 = vpop.permute.xlu0 %2726  ;;  %vm4289_vm9 = vmmov %vm4288_vm4 }
 0x6a1   :  { %v2348_v19 = vpack.c.bf16 %v1712_v0, %v1711_v13  ;;  %v2351_v20 = vpack.c.bf16 %v1714_v4, %v1713_v17  ;;  %v2729_v23 = vunpack.i.h.bf16 %v2727_v11  ;;  %v2728_v30 = vunpack.i.l.bf16 %v2727_v11  ;;  %v2747_v31 = vpop.permute.xlu1 %2746  ;;  %vm4290_vm6 = vmmov %vm4288_vm4 }
 0x6a2   :  { %v2749_v63 = vunpack.i.h.bf16 %v2747_v31  ;;  %v2748_v1 = vunpack.i.l.bf16 %v2747_v31  ;;  %vm4291_vm0 = vmmov %vm4288_vm4  ;;  %vm4292_vm14 = vcmp.lt.s32.totalorder %v3000_v12, 15 }
 0x6a3   :  { %2349 = vmatprep.subr.msk.bf16.mxu1 %vm3375_vm2, %v2348_v19 }
 0x6a4   :  { %v1732_v5 = vsel %vm4288_vm4, %v2749_v63, %v2729_v23  ;;  %v1731_v7 = vsel %vm4289_vm9, %v2748_v1, %v2728_v30  ;;  %v2732_v32 = vpop.permute.xlu0 %2731  ;;  %2352 = vmatpush1.bf16.msk.msra.mxu1 %vm3390_vm5, %v2351_v20  ;;  %v1729_v37 = vsel %vm4290_vm6, %v2728_v30, %v2748_v1  ;;  %v1730_v38 = vsel %vm4291_vm0, %v2729_v23, %v2749_v63  ;;  %vm4293_vm4 = vmmov %vm4292_vm14 }
 0x6a5   :  { %v2354_v39 = vpack.c.bf16 %v1732_v5, %v1731_v7  ;;  %v2734_v40 = vunpack.i.h.bf16 %v2732_v32  ;;  %v2733_v52 = vunpack.i.l.bf16 %v2732_v32  ;;  %v2752_v50 = vpop.permute.xlu1 %2751  ;;  %v1738_v41 = vpack.c.bf16 %v1730_v38, %v1729_v37  ;;  %vm4294_vm9 = vmmov %vm4293_vm4 }
 0x6a6   :  { %v2754_v42 = vunpack.i.h.bf16 %v2752_v50  ;;  %v2753_v43 = vunpack.i.l.bf16 %v2752_v50  ;;  %vm4295_vm6 = vmmov %vm4293_vm4  ;;  %vm4296_vm0 = vcmp.lt.s32.totalorder %v3000_v12, 1 }
 0x6a7   :  { %1865 = vmatprep.subr.bf16.mxu1 %v1738_v41 }
 0x6a8   :  { %v1748_v28 = vsel %vm4292_vm14, %v2734_v40, %v2754_v42  ;;  %v1750_v44 = vsel %vm4293_vm4, %v2754_v42, %v2734_v40  ;;  %v1747_v45 = vsel %vm4294_vm9, %v2733_v52, %v2753_v43  ;;  %v1749_v18 = vsel %vm4295_vm6, %v2753_v43, %v2733_v52  ;;  %v2737_v8 = vpop.permute.xlu0 %2736  ;;  %2355 = vmatpush1.bf16.msk.msra.mxu1 %vm3409_vm12, %v2354_v39  ;;  %vm4297_vm14 = vmmov %vm4296_vm0 }
 0x6a9   :  { %v2357_v47 = vpack.c.bf16 %v1748_v28, %v1747_v45  ;;  %v2360_v48 = vpack.c.bf16 %v1750_v44, %v1749_v18  ;;  %v2739_v49 = vunpack.i.h.bf16 %v2737_v8  ;;  %v2738_v51 = vunpack.i.l.bf16 %v2737_v8  ;;  %v2757_v6 = vpop.permute.xlu1 %2756  ;;  %vm4298_vm4 = vmmov %vm4296_vm0 }
 0x6aa   :  { %v2759_v55 = vunpack.i.h.bf16 %v2757_v6  ;;  %v2758_v57 = vunpack.i.l.bf16 %v2757_v6  ;;  %vm4299_vm9 = vmmov %vm4296_vm0  ;;  %vm4300_vm6 = vcmp.lt.s32.totalorder %v3000_v12, 127 }
 0x6ab   :  { %2358 = vmatprep.subr.msk.bf16.mxu1 %vm3416_vm15, %v2357_v47 }
 0x6ac   :  { %v1766_v59 = vsel %vm4296_vm0, %v2739_v49, %v2759_v55  ;;  %v1768_v29 = vsel %vm4297_vm14, %v2759_v55, %v2739_v49  ;;  %v1765_v60 = vsel %vm4298_vm4, %v2738_v51, %v2758_v57  ;;  %v1767_v61 = vsel %vm4299_vm9, %v2758_v57, %v2738_v51  ;;  %v2762_v62 = vpop.permute.xlu0 %2761  ;;  %2361 = vmatpush1.bf16.msk.msra.mxu1 %vm3433_vm8, %v2360_v48  ;;  %vm4301_vm0 = vmmov %vm4300_vm6 }
 0x6ad   :  { %v2363_v0 = vpack.c.bf16 %v1766_v59, %v1765_v60  ;;  %v2366_v4 = vpack.c.bf16 %v1768_v29, %v1767_v61  ;;  %v2764_v13 = vunpack.i.h.bf16 %v2762_v62  ;;  %v2763_v17 = vunpack.i.l.bf16 %v2762_v62  ;;  %v2782_v11 = vpop.permute.xlu1 %2781  ;;  %vm4303_vm4 = vmmov %vm4301_vm0 }
 0x6ae   :  { %v2784_v19 = vunpack.i.h.bf16 %v2782_v11  ;;  %v2783_v20 = vunpack.i.l.bf16 %v2782_v11  ;;  %vm4302_vm14 = vnez %v4177_v16  ;;  %vm4304_vm9 = vmmov %vm4301_vm0 }
 0x6af   :  { %2364 = vmatprep.subr.msk.bf16.mxu1 %vm4264_vm1, %v2363_v0 }
 0x6b0   :  { %v1788_v23 = vsel %vm4300_vm6, %v2784_v19, %v2764_v13  ;;  %v1787_v30 = vsel %vm4301_vm0, %v2783_v20, %v2763_v17  ;;  %v2767_v31 = vpop.permute.xlu0 %2766  ;;  %2367 = vmatpush1.bf16.msk.msra.mxu1 %vm4302_vm14, %v2366_v4  ;;  %v1786_v37 = vsel %vm4303_vm4, %v2764_v13, %v2784_v19  ;;  %v1785_v38 = vsel %vm4304_vm9, %v2763_v17, %v2783_v20  ;;  %v2891_v20 = vld [vmem:[%s4116_s7] ss:$8 sps:$4 sm:$0xff]  }
 0x6b1   :  { %v2769_v63 = vunpack.i.h.bf16 %v2767_v31  ;;  %v2768_v1 = vunpack.i.l.bf16 %v2767_v31  ;;  %v2787_v5 = vpop.permute.xlu1 %2786  ;;  %1871 = vmatprep.subr.bf16.mxu1 %v3827_v27  ;;  %v2369_v39 = vpack.c.bf16 %v1788_v23, %v1787_v30  ;;  %vm4305_vm6 = vcmp.lt.s32.totalorder %v3000_v12, 113 }
 0x6b2   :  { %v2789_v7 = vunpack.i.h.bf16 %v2787_v5  ;;  %v2788_v32 = vunpack.i.l.bf16 %v2787_v5  ;;  %vm4306_vm0 = vmmov %vm4305_vm6  ;;  %vm4307_vm14 = vnez %v4182_v46  ;;  %v2372_v43 = vpack.c.bf16 %v1786_v37, %v1785_v38 }
 0x6b3   :  { %vm4308_vm4 = vmmov %vm4306_vm0 }
 0x6b4   :  { %v1806_v40 = vsel %vm4305_vm6, %v2789_v7, %v2769_v63  ;;  %v1805_v52 = vsel %vm4306_vm0, %v2788_v32, %v2768_v1  ;;  %v2772_v50 = vpop.permute.xlu0 %2771  ;;  %1872 = vmatpush1.bf16.msra.mxu1 %v3829_v54  ;;  %v1804_v45 = vsel %vm4308_vm4, %v2769_v63, %v2789_v7  ;;  %vm4309_vm9 = vmmov %vm4306_vm0  ;;  %vm4310_vm6 = vcmp.lt.s32.totalorder %v3000_v12, 112 }
 0x6b5   :  { %v2774_v41 = vunpack.i.h.bf16 %v2772_v50  ;;  %v2773_v27 = vunpack.i.l.bf16 %v2772_v50  ;;  %v2792_v42 = vpop.permute.xlu1 %2791  ;;  %2370 = vmatprep.subr.msk.bf16.mxu1 %vm4307_vm14, %v2369_v39  ;;  %v1803_v18 = vsel %vm4309_vm9, %v2768_v1, %v2788_v32  ;;  %v2375_v8 = vpack.c.bf16 %v1806_v40, %v1805_v52  ;;  %vm4311_vm0 = vmmov %vm4310_vm6  ;;  %v3983_v39 = vld.sshfl [vmem:[%s4117_s8] sm:$0x11 pattern:$0x75316420]  ;;  %s2927_s8 = smov [#allocation3]  }
 0x6b6   :  { %v2794_v28 = vunpack.i.h.bf16 %v2792_v42  ;;  %v2793_v44 = vunpack.i.l.bf16 %v2792_v42  ;;  %vm4312_vm14 = vnez %v4191_v58  ;;  %v2378_v55 = vpack.c.bf16 %v1804_v45, %v1803_v18  ;;  %vm4313_vm4 = vmmov %vm4311_vm0 }
 0x6b7   :  { %vm4314_vm9 = vmmov %vm4311_vm0  ;;  %v2061_v52 = vcombine.high %v3983_v39, %v3983_v39 }
 0x6b8   :  { %v1824_v47 = vsel %vm4310_vm6, %v2794_v28, %v2774_v41  ;;  %v1823_v54 = vsel %vm4311_vm0, %v2793_v44, %v2773_v27  ;;  %v2777_v48 = vpop.permute.xlu0 %2776  ;;  %2373 = vmatpush1.bf16.msk.msra.mxu1 %vm3493_vm11, %v2372_v43  ;;  %v1822_v29 = vsel %vm4313_vm4, %v2774_v41, %v2794_v28  ;;  %v1821_v60 = vsel %vm4314_vm9, %v2773_v27, %v2793_v44 }
 0x6b9   :  { %v2779_v49 = vunpack.i.h.bf16 %v2777_v48  ;;  %v2778_v51 = vunpack.i.l.bf16 %v2777_v48  ;;  %v2797_v6 = vpop.permute.xlu1 %2796  ;;  %2376 = vmatprep.subr.msk.bf16.mxu1 %vm4312_vm14, %v2375_v8  ;;  %v2381_v61 = vpack.c.bf16 %v1824_v47, %v1823_v54  ;;  %vm4315_vm6 = vcmp.lt.s32.totalorder %v3000_v12, 111 }
 0x6ba   :  { %v2799_v57 = vunpack.i.h.bf16 %v2797_v6  ;;  %v2798_v59 = vunpack.i.l.bf16 %v2797_v6  ;;  %vm4316_vm0 = vmmov %vm4315_vm6  ;;  %v1829_v4 = vpack.c.bf16 %v1822_v29, %v1821_v60  ;;  %vm4320_vm9 = vcmp.lt.s32.totalorder %v3000_v12, 17 }
 0x6bb   :  { %vm4317_vm14 = vmmov %vm4316_vm0 }
 0x6bc   :  { %v1842_v62 = vsel %vm4315_vm6, %v2799_v57, %v2779_v49  ;;  %v1841_v0 = vsel %vm4316_vm0, %v2798_v59, %v2778_v51  ;;  %2379 = vmatpush1.bf16.msk.msra.mxu1 %vm3519_vm3, %v2378_v55  ;;  %v1840_v13 = vsel %vm4317_vm14, %v2779_v49, %v2799_v57  ;;  %vm4318_vm4 = vmmov %vm4316_vm0  ;;  %vm4319_vm14 = vcmask 130048  }
 0x6bd   :  { %2382 = vmatprep.subr.msk.bf16.mxu1 %vm3528_vm10, %v2381_v61  ;;  %v1839_v17 = vsel %vm4318_vm4, %v2778_v51, %v2798_v59  ;;  %v2384_v11 = vpack.c.bf16 %v1842_v62, %v1841_v0  ;;  %vm4321_vm6 = vmmov %vm4320_vm9 }
 0x6be   :  { %v2387_v19 = vpack.c.bf16 %v1840_v13, %v1839_v17  ;;  %vm4322_vm0 = vmmov %vm4321_vm6 }
 0x6bf   :  { %vm4323_vm4 = vmmov %vm4322_vm0 }
 0x6c0   :  { %1878 = vmatpush1.bf16.msra.mxu1 %v1829_v4 }
 0x6c1   :  { %2385 = vmatprep.subr.msk.bf16.mxu1 %vm3547_vm7, %v2384_v11 }
 0x6c4   :  { %2388 = vmatpush1.bf16.msk.msra.mxu1 %vm3558_vm13, %v2387_v19 }
 0x6c7   :  { %1896 = vmatmul.mubr.bf16.vlgmr.msra.gmra.mrb[12].mxu1 %v2891_v20 }
 0x79a   :  { %v1897_v23 = vpop.f32.mrb[12].mxu1 }
 0x79b   :  { %v1899_v30 = vpop.f32.mrb[13].mxu1  ;;  %v3947_v63 = vadd.f32 %v1897_v23, %v3691_v21 }
 0x79c   :  { %v1901_v31 = vpop.f32.mrb[14].mxu1  ;;  %v3953_v7 = vadd.f32 %v1899_v30, %v3697_v33  ;;  %v2926_v33 = vmov 1966171168  }
 0x79d   :  { %v3950_v1 = vadd.f32 %v1901_v31, %v3694_v22  ;;  %v1903_v5 = vpop.f32.mrb[15].mxu1 }
 0x79e   :  { %v3956_v32 = vadd.f32 %v1903_v5, %v3700_v25  ;;  %v2063_v25 = vunpack.c.l.s4 %v2926_v33 }
 0x79f   :  { %v2800_v37 = vpack.i.bf16 %v3950_v1, %v3947_v63  ;;  %v1978_v22 = vpack.c.bf16 %v3950_v1, %v3947_v63 }
 0x7a0   :  { %v2820_v38 = vpack.i.bf16 %v3956_v32, %v3953_v7  ;;  %v1979_v21 = vpack.c.bf16 %v3956_v32, %v3953_v7  ;;  %v2064_v40 = vunpack.c.0.s8 %v2063_v25 }
 0x7a1   :  { %2801 = vrot.lane.b32.xlu0 %v2800_v37, %s2924_s19 }
 0x7a2   :  { %2821 = vrot.lane.b32.xlu1 %v2820_v38, %s2924_s19  ;;  %v3989_v50 = vsub.s32 %v2064_v40, %v2982_v3 }
 0x7a4   :  { %v2075_v41 = vrot.slane %v2061_v52, %v3989_v50  ;;  %v2068_v10 = vrot.slane %v3983_v39, %v3989_v50 }
 0x7a5   :  { %2806 = vrot.lane.b32.xlu0 %v2800_v37, %s2923_s18 }
 0x7a6   :  { %2826 = vrot.lane.b32.xlu1 %v2820_v38, %s2923_s18  ;;  %2433 = vmatprep.mubr.msk.bf16.mxu0 %vm4319_vm14, %v2075_v41  ;;  %vm4324_vm14 = vcmp.lt.s32.totalorder %v3000_v12, 16 }
 0x7a9   :  { %2811 = vrot.lane.b32.xlu0 %v2800_v37, %s2919_s14 }
 0x7aa   :  { %2831 = vrot.lane.b32.xlu1 %v2820_v38, %s2919_s14 }
 0x7ad   :  { %2816 = vrot.lane.b32.xlu0 %v2800_v37, %s2918_s1 }
 0x7ae   :  { %2836 = vrot.lane.b32.xlu1 %v2820_v38, %s2918_s1  ;;  %s2150_s1 = sshll.u32 %s2927_s8, 4  ;;  %s2151_s1 = int_to_ptr.vmem [resolvable:$true] %s2150_s1 }
 0x7af   :  { %p2897_p1 = scmp.lt.s32.totalorder %s2151_s1, %s2151_s1 }
 0x7b1   :  { %2841 = vrot.lane.b32.xlu0 %v2800_v37, %s2920_s15 }
 0x7b2   :  { %2856 = vrot.lane.b32.xlu1 %v2820_v38, %s2920_s15  ;;  %s2892_s15 = scalar_lea.vmem %s2151_s1, 32 }
 0x7b3   :  { %p2893_p0 = scmp.ne.s32.totalorder %s2151_s1, %s2892_s15  ;;  %p2898_p2 = scmp.lt.s32.totalorder %s2892_s15, %s2892_s15 }
 0x7b5   :  { %2846 = vrot.lane.b32.xlu0 %v2800_v37, %s2921_s16  ;;  %p2899_p3 = por %p2898_p2, %p2897_p1 }
 0x7b6   :  { %2861 = vrot.lane.b32.xlu1 %v2820_v38, %s2921_s16 }
 0x7b7   :  { %p2900_p4 = pnand %p2899_p3, %p2893_p0 }
 0x7b9   :  { %2851 = vrot.lane.b32.xlu0 %v2800_v37, %s2922_s17 }
 0x7ba   :  { %2866 = vrot.lane.b32.xlu1 %v2820_v38, %s2922_s17 }
 0x7bd   :  { %2871 = vrot.lane.b32.xlu0 %v2800_v37, %s2925_s20 }
 0x7be   :  { %2876 = vrot.lane.b32.xlu1 %v2820_v38, %s2925_s20 }
 0x813   :  { %v2802_v27 = vpop.permute.xlu0 %2801 }
 0x814   :  { %v2804_v42 = vunpack.i.h.bf16 %v2802_v27  ;;  %v2803_v43 = vunpack.i.l.bf16 %v2802_v27  ;;  %v2822_v28 = vpop.permute.xlu1 %2821 }
 0x815   :  { %v2824_v44 = vunpack.i.h.bf16 %v2822_v28  ;;  %v2823_v45 = vunpack.i.l.bf16 %v2822_v28 }
 0x817   :  { %v1914_v18 = vsel %vm4320_vm9, %v2803_v43, %v2823_v45  ;;  %v1915_v8 = vsel %vm4321_vm6, %v2804_v42, %v2824_v44  ;;  %v1916_v3 = vsel %vm4322_vm0, %v2823_v45, %v2803_v43  ;;  %v1917_v47 = vsel %vm4323_vm4, %v2824_v44, %v2804_v42  ;;  %v2807_v54 = vpop.permute.xlu0 %2806  ;;  %vm4325_vm9 = vmmov %vm4324_vm14 }
 0x818   :  { %v2392_v48 = vpack.c.bf16 %v1915_v8, %v1914_v18  ;;  %v2395_v49 = vpack.c.bf16 %v1917_v47, %v1916_v3  ;;  %v2809_v51 = vunpack.i.h.bf16 %v2807_v54  ;;  %v2808_v6 = vunpack.i.l.bf16 %v2807_v54  ;;  %v2827_v55 = vpop.permute.xlu1 %2826  ;;  %vm4326_vm6 = vmmov %vm4325_vm9 }
 0x819   :  { %v2829_v57 = vunpack.i.h.bf16 %v2827_v55  ;;  %v2828_v59 = vunpack.i.l.bf16 %v2827_v55  ;;  %vm4327_vm0 = vmmov %vm4326_vm6 }
 0x81a   :  { %2393 = vmatprep.subr.msk.bf16.mxu0 %vm3375_vm2, %v2392_v48  ;;  %vm4328_vm2 = vcmp.lt.s32.totalorder %v3000_v12, 15 }
 0x81b   :  { %v1934_v29 = vsel %vm4324_vm14, %v2828_v59, %v2808_v6  ;;  %v1935_v60 = vsel %vm4325_vm9, %v2829_v57, %v2809_v51  ;;  %v2812_v61 = vpop.permute.xlu0 %2811  ;;  %2396 = vmatpush1.bf16.msk.msra.mxu0 %vm3390_vm5, %v2395_v49  ;;  %v1932_v62 = vsel %vm4326_vm6, %v2808_v6, %v2828_v59  ;;  %v1933_v0 = vsel %vm4327_vm0, %v2809_v51, %v2829_v57  ;;  %vm4329_vm4 = vmmov %vm4328_vm2 }
 0x81c   :  { %v2398_v4 = vpack.c.bf16 %v1935_v60, %v1934_v29  ;;  %v2814_v13 = vunpack.i.h.bf16 %v2812_v61  ;;  %v2813_v26 = vunpack.i.l.bf16 %v2812_v61  ;;  %v2832_v17 = vpop.permute.xlu1 %2831  ;;  %v1941_v11 = vpack.c.bf16 %v1933_v0, %v1932_v62  ;;  %vm4330_vm5 = vmmov %vm4328_vm2 }
 0x81d   :  { %v2834_v19 = vunpack.i.h.bf16 %v2832_v17  ;;  %v2833_v20 = vunpack.i.l.bf16 %v2832_v17  ;;  %vm4331_vm14 = vmmov %vm4328_vm2  ;;  %vm4332_vm9 = vcmp.lt.s32.totalorder %v3000_v12, 1 }
 0x81e   :  { %2082 = vmatprep.subr.bf16.mxu0 %v1941_v11  ;;  %vm4333_vm6 = vmmov %vm4332_vm9 }
 0x81f   :  { %v1950_v23 = vsel %vm4328_vm2, %v2813_v26, %v2833_v20  ;;  %v1951_v14 = vsel %vm4329_vm4, %v2814_v13, %v2834_v19  ;;  %v1952_v30 = vsel %vm4330_vm5, %v2833_v20, %v2813_v26  ;;  %v1953_v31 = vsel %vm4331_vm14, %v2834_v19, %v2814_v13  ;;  %v2817_v5 = vpop.permute.xlu0 %2816  ;;  %2399 = vmatpush1.bf16.msk.msra.mxu0 %vm3409_vm12, %v2398_v4  ;;  %vm4334_vm0 = vmmov %vm4333_vm6 }
 0x820   :  { %v2401_v37 = vpack.c.bf16 %v1951_v14, %v1950_v23  ;;  %v2404_v38 = vpack.c.bf16 %v1953_v31, %v1952_v30  ;;  %v2819_v33 = vunpack.i.h.bf16 %v2817_v5  ;;  %v2818_v25 = vunpack.i.l.bf16 %v2817_v5  ;;  %v2837_v40 = vpop.permute.xlu1 %2836  ;;  %vm4335_vm12 = vmmov %vm4334_vm0 }
 0x821   :  { %v2839_v52 = vunpack.i.h.bf16 %v2837_v40  ;;  %v2838_v41 = vunpack.i.l.bf16 %v2837_v40  ;;  %vm4338_vm4 = vnez %v4177_v16  ;;  %vm4341_vm5 = vcmp.lt.s32.totalorder %v3000_v12, 113 }
 0x822   :  { %2402 = vmatprep.subr.msk.bf16.mxu0 %vm3416_vm15, %v2401_v37  ;;  %vm4336_vm15 = vcmp.lt.s32.totalorder %v3000_v12, 127  ;;  %vm4342_vm14 = vmmov %vm4341_vm5 }
 0x823   :  { %v1968_v27 = vsel %vm4332_vm9, %v2818_v25, %v2838_v41  ;;  %v1969_v42 = vsel %vm4333_vm6, %v2819_v33, %v2839_v52  ;;  %v1970_v53 = vsel %vm4334_vm0, %v2838_v41, %v2818_v25  ;;  %v1971_v43 = vsel %vm4335_vm12, %v2839_v52, %v2819_v33  ;;  %v2842_v28 = vpop.permute.xlu0 %2841  ;;  %2405 = vmatpush1.bf16.msk.msra.mxu0 %vm3433_vm8, %v2404_v38  ;;  %vm4337_vm2 = vmmov %vm4336_vm15 }
 0x824   :  { %v2407_v44 = vpack.c.bf16 %v1969_v42, %v1968_v27  ;;  %v2410_v45 = vpack.c.bf16 %v1971_v43, %v1970_v53  ;;  %v2844_v56 = vunpack.i.h.bf16 %v2842_v28  ;;  %v2843_v18 = vunpack.i.l.bf16 %v2842_v28  ;;  %v2857_v8 = vpop.permute.xlu1 %2856  ;;  %vm4339_vm8 = vmmov %vm4337_vm2 }
 0x825   :  { %v2859_v3 = vunpack.i.h.bf16 %v2857_v8  ;;  %v2858_v47 = vunpack.i.l.bf16 %v2857_v8  ;;  %vm4343_vm9 = vnez %v4182_v46  ;;  %vm4344_vm6 = vmmov %vm4341_vm5  ;;  %vm4346_vm12 = vcmp.lt.s32.totalorder %v3000_v12, 112 }
 0x826   :  { %2408 = vmatprep.subr.msk.bf16.mxu0 %vm4264_vm1, %v2407_v44  ;;  %vm4340_vm1 = vmmov %vm4337_vm2 }
 0x827   :  { %v1990_v54 = vsel %vm4336_vm15, %v2858_v47, %v2843_v18  ;;  %v1991_v48 = vsel %vm4337_vm2, %v2859_v3, %v2844_v56  ;;  %v2847_v49 = vpop.permute.xlu0 %2846  ;;  %2411 = vmatpush1.bf16.msk.msra.mxu0 %vm4338_vm4, %v2410_v45  ;;  %v1988_v57 = vsel %vm4339_vm8, %v2843_v18, %v2858_v47  ;;  %v1989_v59 = vsel %vm4340_vm1, %v2844_v56, %v2859_v3  ;;  %vm4345_vm0 = vmmov %vm4341_vm5 }
 0x828   :  { %v2849_v35 = vunpack.i.h.bf16 %v2847_v49  ;;  %v2848_v51 = vunpack.i.l.bf16 %v2847_v49  ;;  %v2862_v6 = vpop.permute.xlu1 %2861  ;;  %2088 = vmatprep.subr.bf16.mxu0 %v1979_v21  ;;  %v2413_v29 = vpack.c.bf16 %v1991_v48, %v1990_v54  ;;  %v2416_v62 = vpack.c.bf16 %v1989_v59, %v1988_v57  ;;  %vm4347_vm15 = vmmov %vm4346_vm12 }
 0x829   :  { %v2864_v55 = vunpack.i.h.bf16 %v2862_v6  ;;  %v2863_v36 = vunpack.i.l.bf16 %v2862_v6  ;;  %vm4348_vm2 = vnez %v4191_v58  ;;  %vm4349_vm4 = vmmov %vm4346_vm12  ;;  %vm4351_vm1 = vcmp.lt.s32.totalorder %v3000_v12, 111 }
 0x82a   :  { %vm4350_vm8 = vmmov %vm4349_vm4 }
 0x82b   :  { %v2008_v16 = vsel %vm4341_vm5, %v2863_v36, %v2848_v51  ;;  %v2009_v60 = vsel %vm4342_vm14, %v2864_v55, %v2849_v35  ;;  %v2852_v61 = vpop.permute.xlu0 %2851  ;;  %2089 = vmatpush1.bf16.msra.mxu0 %v1978_v22  ;;  %v2006_v13 = vsel %vm4344_vm6, %v2848_v51, %v2863_v36  ;;  %v2007_v26 = vsel %vm4345_vm0, %v2849_v35, %v2864_v55  ;;  %vm4353_vm5 = vmmov %vm4351_vm1 }
 0x82c   :  { %v2854_v7 = vunpack.i.h.bf16 %v2852_v61  ;;  %v2853_v32 = vunpack.i.l.bf16 %v2852_v61  ;;  %v2867_v21 = vpop.permute.xlu1 %2866  ;;  %2414 = vmatprep.subr.msk.bf16.mxu0 %vm4343_vm9, %v2413_v29  ;;  %v2419_v17 = vpack.c.bf16 %v2009_v60, %v2008_v16  ;;  %v2422_v20 = vpack.c.bf16 %v2007_v26, %v2006_v13  ;;  %vm4354_vm14 = vmmov %vm4351_vm1 }
 0x82d   :  { %v2869_v0 = vunpack.i.h.bf16 %v2867_v21  ;;  %v2868_v4 = vunpack.i.l.bf16 %v2867_v21 }
 0x82f   :  { %v2026_v63 = vsel %vm4346_vm12, %v2868_v4, %v2853_v32  ;;  %v2027_v1 = vsel %vm4347_vm15, %v2869_v0, %v2854_v7  ;;  %v2872_v22 = vpop.permute.xlu0 %2871  ;;  %2417 = vmatpush1.bf16.msk.msra.mxu0 %vm3493_vm11, %v2416_v62  ;;  %v2024_v30 = vsel %vm4349_vm4, %v2853_v32, %v2868_v4  ;;  %v2025_v31 = vsel %vm4350_vm8, %v2854_v7, %v2869_v0  ;;  %vm4352_vm11 = vmmov %vm4351_vm1 }
 0x830   :  { %v2874_v46 = vunpack.i.h.bf16 %v2872_v22  ;;  %v2873_v11 = vunpack.i.l.bf16 %v2872_v22  ;;  %v2877_v19 = vpop.permute.xlu1 %2876  ;;  %2420 = vmatprep.subr.msk.bf16.mxu0 %vm4348_vm2, %v2419_v17  ;;  %v2425_v5 = vpack.c.bf16 %v2027_v1, %v2026_v63  ;;  %v2032_v58 = vpack.c.bf16 %v2025_v31, %v2024_v30 }
 0x831   :  { %v2879_v23 = vunpack.i.h.bf16 %v2877_v19  ;;  %v2878_v14 = vunpack.i.l.bf16 %v2877_v19 }
 0x833   :  { %v2044_v9 = vsel %vm4351_vm1, %v2878_v14, %v2873_v11  ;;  %v2045_v37 = vsel %vm4352_vm11, %v2879_v23, %v2874_v46  ;;  %2423 = vmatpush1.bf16.msk.msra.mxu0 %vm3519_vm3, %v2422_v20  ;;  %v2042_v38 = vsel %vm4353_vm5, %v2873_v11, %v2878_v14  ;;  %v2043_v33 = vsel %vm4354_vm14, %v2874_v46, %v2879_v23 }
 0x834   :  { %2426 = vmatprep.subr.msk.bf16.mxu0 %vm3528_vm10, %v2425_v5  ;;  %v2428_v25 = vpack.c.bf16 %v2045_v37, %v2044_v9  ;;  %v2431_v40 = vpack.c.bf16 %v2043_v33, %v2042_v38  ;;  %vm2141_vm3 = vcmp.lt.s32.totalorder %v36_v2, 256 }
 0x837   :  { %2095 = vmatpush1.bf16.msra.mxu0 %v2032_v58 }
 0x838   :  { %2429 = vmatprep.subr.msk.bf16.mxu0 %vm3547_vm7, %v2428_v25 }
 0x83b   :  { %2432 = vmatpush1.bf16.msk.msra.mxu0 %vm3558_vm13, %v2431_v40 }
 0x83e   :  { %2113 = vmatmul.mubr.bf16.vlgmr.msra.gmra.mrb[8].mxu0 %v2068_v10 }
 0x911   :  { %v2114_v24 = vpop.f32.mrb[8].mxu0 }
 0x912   :  { %v2116_v52 = vpop.f32.mrb[9].mxu0 }
 0x913   :  { %v2123_v41 = vcombine.low %v2114_v24, %v2116_v52  ;;  %v2118_v27 = vpop.f32.mrb[10].mxu0 }
 0x914   :  { %v2119_v42 = vpop.f32.mrb[11].mxu0 }
 0x915   :  { %v2130_v12 = vrot.slane %v2123_v41, %v3989_v50 }
 0x917   :  { %v2137_v15 = vrot.slane %v2130_v12, %v3989_v50 }
 0x919   :  { %2143 = vst.msk [vmem:[#allocation3] sm:$0x3] %vm2141_vm3, %v2137_v15 }
 0x91a   :  { %2903 = shalt.err (!%p2900_p4)
}
 0x91b   :  { %s2904_s18 = scalar_lea.hbm %s4118_s9, 32 }
 0x91c   :  { %p2905_p5 = scmp.ne.s32.totalorder %s4118_s9, %s2904_s18  ;;  %p2908_p6 = scmp.lt.u32.totalorder %s2904_s18, %s4118_s9 }
 0x91e   :  { %p2910_p7 = pnand %p2908_p6, %p2905_p5 }
 0x920   :  { %2913 = shalt.err (!%p2910_p7)
}
 0x921   :  { %2153 = dma.vmem_to_hbm [thread:$0]  %s2151_s1, 32, %s4118_s9, [#allocation4]  }
 0x922   :  { %2914 = dma.done.wait [#allocation4], 32  }
 0x923   :  { %2915 = vsyncadd [#allocation4], 4294967264 }
 0x924   :  { %2157 = vsyncpa [#allocation4], 1 }

</bundles_post_ra>
